<compile_context>
chip_gen: v7x
topology: tpu7x:2x2x1
jax: 0.10.0
libtpu: 0.0.40
codegen_flags: <defaults>
</compile_context>

<pallas_src>
import math
from functools import partial

import jax
import jax.numpy as jnp
from jax import lax
from jax.experimental import pallas as pl
from jax.experimental.pallas import tpu as pltpu

_NEG_INF = -1e30                        # finite sentinel: exp underflows to 0
_DN_AB_T = (((1,), (1,)), ((), ()))     # A @ B^T via contraction on last dims


def _round_up(x, m):
    return ((x + m - 1) // m) * m


# --------------------------------------------------------------------------- #
# K / V projection kernel (hoisted: computed once, not once per q-tile)
# --------------------------------------------------------------------------- #
def _kv_project_kernel(k_ref, v_ref, wk_ref, bk_ref, wv_ref, bv_ref,
                       pk_ref, pv_ref, *, compute_dtype):
    kk = k_ref[...].astype(compute_dtype)
    vv = v_ref[...].astype(compute_dtype)
    wk = wk_ref[...].astype(compute_dtype)
    wv = wv_ref[...].astype(compute_dtype)
    pk = lax.dot_general(kk, wk, _DN_AB_T, preferred_element_type=jnp.float32) + bk_ref[...]
    pv = lax.dot_general(vv, wv, _DN_AB_T, preferred_element_type=jnp.float32) + bv_ref[...]
    pk_ref[...] = pk.astype(pk_ref.dtype)
    pv_ref[...] = pv.astype(pv_ref.dtype)


# --------------------------------------------------------------------------- #
# Flash attention kernel: grid = (q tiles [parallel], kv tiles [reduction])
# --------------------------------------------------------------------------- #
def _flash_attn_kernel(q_ref, wq_ref, bq_ref, pk_ref, pv_ref, mask_ref,
                       o_ref, pq_s, m_s, l_s, *, scale, compute_dtype):
    kv = pl.program_id(1)

    @pl.when(kv == 0)
    def _init():
        # Fuse the Q projection once per q-tile; fold 1/sqrt(d_v) into pq.
        pq = lax.dot_general(q_ref[...].astype(compute_dtype),
                             wq_ref[...].astype(compute_dtype),
                             _DN_AB_T, preferred_element_type=jnp.float32)
        pq_s[...] = ((pq + bq_ref[...]) * scale).astype(pq_s.dtype)  # cast ONCE
        m_s[...] = jnp.full_like(m_s, _NEG_INF)
        l_s[...] = jnp.zeros_like(l_s)
        o_ref[...] = jnp.zeros_like(o_ref)          # o_ref doubles as accumulator

    # Score tile = pq @ pk^T (contraction on the feature dim, no transpose copy).
    s = lax.dot_general(pq_s[...], pk_ref[...], _DN_AB_T,
                        preferred_element_type=jnp.float32)

    # masked_fill(mask, -inf) with a finite sentinel; integer-domain compare.
    s = jnp.where(mask_ref[...] != 0, _NEG_INF, s)

    # Online softmax update (f32 on VPU/EUP); accumulate into the resident o_ref.
    m_prev = m_s[...]
    m_new = jnp.maximum(m_prev, jnp.max(s, axis=1, keepdims=True))
    alpha = jnp.exp(m_prev - m_new)
    p = jnp.exp(s - m_new)
    l_s[...] = alpha * l_s[...] + jnp.sum(p, axis=1, keepdims=True)
    o_ref[...] = alpha * o_ref[...] + jnp.dot(p.astype(compute_dtype), pv_ref[...],
                                              preferred_element_type=jnp.float32)
    m_s[...] = m_new

    @pl.when(kv == pl.num_programs(1) - 1)
    def _finalize():
        o_ref[...] = o_ref[...] / l_s[...]          # exact divide, once per q-tile


# --------------------------------------------------------------------------- #
# Wrapper
# --------------------------------------------------------------------------- #
def singlehead_attention_pallas(q, k, v, mask, params, d_k, d_v, *,
                                block_q=128, block_k=256, use_bf16=True):
    """q: (Sq, Dm), k/v: (Sk, Dm), mask: (Sq, Sk) nonzero = masked (or None).

    params weights stay in PyTorch layout: wq/wk/wv are (d_out, d_model),
    biases (d_out,).  use_bf16 casts only the MXU operands (default True);
    softmax math stays f32.
    """
    seq_q, d_model = q.shape
    seq_k = k.shape[0]
    compute_dtype = jnp.bfloat16 if use_bf16 else jnp.float32
    cdt_bytes = 2 if use_bf16 else 4

    # ---- tile selection (mask is int8: keep sublane tiles multiples of 32,
    #      lane tiles multiples of 128) --------------------------------------
    bq_blk = min(_round_up(block_q, 32), _round_up(seq_q, 32))
    bk_blk = min(_round_up(block_k, 128), _round_up(seq_k, 128))
    seq_q_p = _round_up(seq_q, bq_blk)
    seq_k_p = _round_up(seq_k, bk_blk)
    n_q = seq_q_p // bq_blk
    n_kv = seq_k_p // bk_blk

    # ---- pad ragged sequence lengths; padded keys are force-masked ----------
    if mask is None:
        mask = jnp.zeros((seq_q, seq_k), jnp.int8)
    mask_i8 = mask.astype(jnp.int8)                 # 4x less DMA than int32
    if (seq_q_p, seq_k_p) != (seq_q, seq_k):
        q = jnp.pad(q, ((0, seq_q_p - seq_q), (0, 0)))
        k = jnp.pad(k, ((0, seq_k_p - seq_k), (0, 0)))
        v = jnp.pad(v, ((0, seq_k_p - seq_k), (0, 0)))
        mask_i8 = jnp.pad(mask_i8, ((0, seq_q_p - seq_q), (0, seq_k_p - seq_k)),
                          constant_values=1)

    wq, wk, wv = params["wq"], params["wk"], params["wv"]   # (out, in), no host .T
    bq = params["bq"].reshape(1, d_k).astype(jnp.float32)
    bk = params["bk"].reshape(1, d_k).astype(jnp.float32)
    bv = params["bv"].reshape(1, d_v).astype(jnp.float32)

    # ---- explicit VMEM budget (double-buffered inputs/outputs + scratch) ----
    flash_est = (2 * (bq_blk * d_model * 4 + d_k * d_model * 4 + d_k * 4
                      + bk_blk * d_k * cdt_bytes + bk_blk * d_v * cdt_bytes
                      + bq_blk * bk_blk)
                 + 2 * bq_blk * d_v * 4
                 + bq_blk * d_k * cdt_bytes + 2 * bq_blk * 4)
    # projection row tile: largest multiple of bk_blk <= 512 dividing seq_k_p
    proj_blk = bk_blk
    mult = 2
    while bk_blk * mult <= 512:
        if seq_k_p % (bk_blk * mult) == 0:
            proj_blk = bk_blk * mult
        mult += 1
    proj_est = 2 * (2 * proj_blk * d_model * 4 + (d_k + d_v) * d_model * 4
                    + (d_k + d_v) * 4
                    + proj_blk * (d_k + d_v) * cdt_bytes)
    vmem_limit = int(min(48 * 1024 * 1024,
                         max(32 * 1024 * 1024, 2 * max(flash_est, proj_est))))

    # ---- project K and V once (parallel grid over key tiles) ----------------
    pk, pv = pl.pallas_call(
        partial(_kv_project_kernel, compute_dtype=compute_dtype),
        out_shape=(jax.ShapeDtypeStruct((seq_k_p, d_k), compute_dtype),
                   jax.ShapeDtypeStruct((seq_k_p, d_v), compute_dtype)),
        grid=(seq_k_p // proj_blk,),
        in_specs=[pl.BlockSpec((proj_blk, d_model), lambda i: (i, 0)),
                  pl.BlockSpec((proj_blk, d_model), lambda i: (i, 0)),
                  pl.BlockSpec((d_k, d_model), lambda i: (0, 0)),
                  pl.BlockSpec((1, d_k), lambda i: (0, 0)),
                  pl.BlockSpec((d_v, d_model), lambda i: (0, 0)),
                  pl.BlockSpec((1, d_v), lambda i: (0, 0))],
        out_specs=(pl.BlockSpec((proj_blk, d_k), lambda i: (i, 0)),
                   pl.BlockSpec((proj_blk, d_v), lambda i: (i, 0))),
        compiler_params=pltpu.CompilerParams(dimension_semantics=("parallel",),
                                             vmem_limit_bytes=vmem_limit),
    )(k, v, wk, bk, wv, bv)

    # ---- flash attention: q tiles [parallel] x kv tiles [reduction] ---------
    scale = 1.0 / math.sqrt(d_v)   # reference divides by sqrt(d_v) -- reproduced
    out = pl.pallas_call(
        partial(_flash_attn_kernel, scale=scale, compute_dtype=compute_dtype),
        out_shape=jax.ShapeDtypeStruct((seq_q_p, d_v), jnp.float32),
        grid=(n_q, n_kv),
        in_specs=[pl.BlockSpec((bq_blk, d_model), lambda qi, ki: (qi, 0)),
                  pl.BlockSpec((d_k, d_model), lambda qi, ki: (0, 0)),
                  pl.BlockSpec((1, d_k), lambda qi, ki: (0, 0)),
                  pl.BlockSpec((bk_blk, d_k), lambda qi, ki: (ki, 0)),
                  pl.BlockSpec((bk_blk, d_v), lambda qi, ki: (ki, 0)),
                  pl.BlockSpec((bq_blk, bk_blk), lambda qi, ki: (qi, ki))],
        out_specs=pl.BlockSpec((bq_blk, d_v), lambda qi, ki: (qi, 0)),
        scratch_shapes=[pltpu.VMEM((bq_blk, d_k), compute_dtype),  # pq (per q-tile)
                        pltpu.VMEM((bq_blk, 1), jnp.float32),      # running max m
                        pltpu.VMEM((bq_blk, 1), jnp.float32)],     # running sum l
        compiler_params=pltpu.CompilerParams(
            dimension_semantics=("parallel", "arbitrary"),
            vmem_limit_bytes=vmem_limit),
    )(q, wq, bq, pk, pv, mask_i8)

    return out[:seq_q] if seq_q_p != seq_q else out


# --------------------------------------------------------------------------- #
# Pure-JAX reference (mirrors the PyTorch module)
# --------------------------------------------------------------------------- #
def _reference_jax(q, k, v, mask, params, d_v):
    pq = q @ params["wq"].T + params["bq"]
    pk = k @ params["wk"].T + params["bk"]
    pv = v @ params["wv"].T + params["bv"]
    score = pq @ pk.T / math.sqrt(d_v)
    if mask is not None:
        score = jnp.where(mask != 0, -jnp.inf, score)
    w = jax.nn.softmax(score, axis=1)
    return w @ pv


if __name__ == "__main__":
    d_model, d_k, d_v = 128, 128, 128

    key = jax.random.PRNGKey(0)
    (kq1, kk1, kv1, kq2, kk2, kv2,
     kwq, kwk, kwv, kbq, kbk, kbv, km1, km2) = jax.random.split(key, 14)

    # PyTorch Linear-style init: weight (out, in), bias (out,).
    bound = 1.0 / math.sqrt(d_model)
    params = {
        "wq": jax.random.uniform(kwq, (d_k, d_model), minval=-bound, maxval=bound, dtype=jnp.float32),
        "wk": jax.random.uniform(kwk, (d_k, d_model), minval=-bound, maxval=bound, dtype=jnp.float32),
        "wv": jax.random.uniform(kwv, (d_v, d_model), minval=-bound, maxval=bound, dtype=jnp.float32),
        "bq": jax.random.uniform(kbq, (d_k,), minval=-bound, maxval=bound, dtype=jnp.float32),
        "bk": jax.random.uniform(kbk, (d_k,), minval=-bound, maxval=bound, dtype=jnp.float32),
        "bv": jax.random.uniform(kbv, (d_v,), minval=-bound, maxval=bound, dtype=jnp.float32),
    }

    # ---- case 1: aligned shapes -> grid (2 q-tiles x 2 kv-tiles) ------------
    seq_q, seq_k = 256, 512
    q = jax.random.normal(kq1, (seq_q, d_model), dtype=jnp.float32)
    k = jax.random.normal(kk1, (seq_k, d_model), dtype=jnp.float32)
    v = jax.random.normal(kv1, (seq_k, d_model), dtype=jnp.float32)
    mask = jax.random.uniform(km1, (seq_q, seq_k)) > 0.7
    mask = mask.at[:, 0].set(False).astype(jnp.int8)   # keep >=1 unmasked key/row

    ref = _reference_jax(q, k, v, mask, params, d_v)

    out_bf16 = jax.block_until_ready(
        singlehead_attention_pallas(q, k, v, mask, params, d_k, d_v))  # bf16 default
    assert out_bf16.shape == (seq_q, d_v)
    assert bool(jnp.isfinite(out_bf16).all())
    assert jnp.allclose(out_bf16, ref, atol=2e-2, rtol=2e-2), "bf16 kernel mismatch vs reference"

    out_f32 = jax.block_until_ready(
        singlehead_attention_pallas(q, k, v, mask, params, d_k, d_v, use_bf16=False))
    assert jnp.allclose(out_f32, ref, atol=1e-4, rtol=1e-4), "f32 kernel mismatch vs reference"

    # ---- case 2: ragged (non-multiple) lengths exercise the padded-tail path -
    seq_q2, seq_k2 = 200, 320
    q2 = jax.random.normal(kq2, (seq_q2, d_model), dtype=jnp.float32)
    k2 = jax.random.normal(kk2, (seq_k2, d_model), dtype=jnp.float32)
    v2 = jax.random.normal(kv2, (seq_k2, d_model), dtype=jnp.float32)
    mask2 = jax.random.uniform(km2, (seq_q2, seq_k2)) > 0.7
    mask2 = mask2.at[:, 0].set(False).astype(jnp.int8)

    ref2 = _reference_jax(q2, k2, v2, mask2, params, d_v)
    out2 = jax.block_until_ready(
        singlehead_attention_pallas(q2, k2, v2, mask2, params, d_k, d_v, use_bf16=False))
    assert out2.shape == (seq_q2, d_v)
    assert jnp.allclose(out2, ref2, atol=1e-4, rtol=1e-4), "ragged-length kernel mismatch vs reference"

    print("KERNEL_OK")
</pallas_src>

<mosaic_0001>
module attributes {stable_mosaic.version = 11 : i64} {
  func.func @_kv_project_kernel(%arg0: i32, %arg1: memref<512x128xf32, #tpu.memory_space<vmem>>, %arg2: memref<512x128xf32, #tpu.memory_space<vmem>>, %arg3: memref<128x128xf32, #tpu.memory_space<vmem>>, %arg4: memref<1x128xf32, #tpu.memory_space<vmem>>, %arg5: memref<128x128xf32, #tpu.memory_space<vmem>>, %arg6: memref<1x128xf32, #tpu.memory_space<vmem>>, %arg7: memref<512x128xbf16, #tpu.memory_space<vmem>>, %arg8: memref<512x128xbf16, #tpu.memory_space<vmem>>) attributes {dimension_semantics = [#tpu.dimension_semantics<parallel>], iteration_bounds = array<i64: 1>, scalar_prefetch = 0 : i64, scratch_operands = 0 : i64, tpu.core_type = #tpu.core_type<tc>, window_params = [{transform_indices = @transform_0, window_bounds = array<i64: 512, 128>}, {transform_indices = @transform_1, window_bounds = array<i64: 512, 128>}, {pipeline_mode = #tpu.pipeline_mode<synchronous>, transform_indices = @transform_2, window_bounds = array<i64: 128, 128>}, {pipeline_mode = #tpu.pipeline_mode<synchronous>, transform_indices = @transform_3, window_bounds = array<i64: 1, 128>}, {pipeline_mode = #tpu.pipeline_mode<synchronous>, transform_indices = @transform_4, window_bounds = array<i64: 128, 128>}, {pipeline_mode = #tpu.pipeline_mode<synchronous>, transform_indices = @transform_5, window_bounds = array<i64: 1, 128>}, {transform_indices = @transform_6, window_bounds = array<i64: 512, 128>}, {transform_indices = @transform_7, window_bounds = array<i64: 512, 128>}]} {
    %c0 = arith.constant 0 : index
    %c0_0 = arith.constant 0 : index
    %0 = vector.load %arg1[%c0, %c0_0] : memref<512x128xf32, #tpu.memory_space<vmem>>, vector<512x128xf32>
    %1 = arith.truncf %0 : vector<512x128xf32> to vector<512x128xbf16>
    %c0_1 = arith.constant 0 : index
    %c0_2 = arith.constant 0 : index
    %2 = vector.load %arg2[%c0_1, %c0_2] : memref<512x128xf32, #tpu.memory_space<vmem>>, vector<512x128xf32>
    %3 = arith.truncf %2 : vector<512x128xf32> to vector<512x128xbf16>
    %c0_3 = arith.constant 0 : index
    %c0_4 = arith.constant 0 : index
    %4 = vector.load %arg3[%c0_3, %c0_4] : memref<128x128xf32, #tpu.memory_space<vmem>>, vector<128x128xf32>
    %5 = arith.truncf %4 : vector<128x128xf32> to vector<128x128xbf16>
    %c0_5 = arith.constant 0 : index
    %c0_6 = arith.constant 0 : index
    %6 = vector.load %arg5[%c0_5, %c0_6] : memref<128x128xf32, #tpu.memory_space<vmem>>, vector<128x128xf32>
    %7 = arith.truncf %6 : vector<128x128xf32> to vector<128x128xbf16>
    %cst = arith.constant dense<0.000000e+00> : vector<512x128xf32>
    %8 = tpu.matmul %1, %5, %cst {dimension_numbers = #tpu.dot_dimension_numbers<[1], [1], [0], [0], [0, 0, 1, 0], [], []>} : vector<512x128xbf16>, vector<128x128xbf16>, vector<512x128xf32> -> vector<512x128xf32>
    %c0_7 = arith.constant 0 : index
    %c0_8 = arith.constant 0 : index
    %9 = vector.load %arg4[%c0_7, %c0_8] : memref<1x128xf32, #tpu.memory_space<vmem>>, vector<1x128xf32>
    %10 = vector.broadcast %9 : vector<1x128xf32> to vector<512x128xf32>
    %11 = arith.addf %8, %10 : vector<512x128xf32>
    %cst_9 = arith.constant dense<0.000000e+00> : vector<512x128xf32>
    %12 = tpu.matmul %3, %7, %cst_9 {dimension_numbers = #tpu.dot_dimension_numbers<[1], [1], [0], [0], [0, 0, 1, 0], [], []>} : vector<512x128xbf16>, vector<128x128xbf16>, vector<512x128xf32> -> vector<512x128xf32>
    %c0_10 = arith.constant 0 : index
    %c0_11 = arith.constant 0 : index
    %13 = vector.load %arg6[%c0_10, %c0_11] : memref<1x128xf32, #tpu.memory_space<vmem>>, vector<1x128xf32>
    %14 = vector.broadcast %13 : vector<1x128xf32> to vector<512x128xf32>
    %15 = arith.addf %12, %14 : vector<512x128xf32>
    %16 = arith.truncf %11 : vector<512x128xf32> to vector<512x128xbf16>
    %c0_12 = arith.constant 0 : index
    %c0_13 = arith.constant 0 : index
    %17 = vector.load %arg7[%c0_12, %c0_13] : memref<512x128xbf16, #tpu.memory_space<vmem>>, vector<512x128xbf16>
    tpu.vector_store %arg7[%c0_12, %c0_13], %16 {strides = array<i32>} : memref<512x128xbf16, #tpu.memory_space<vmem>>, vector<512x128xbf16>,
    %18 = arith.truncf %15 : vector<512x128xf32> to vector<512x128xbf16>
    %c0_14 = arith.constant 0 : index
    %c0_15 = arith.constant 0 : index
    %19 = vector.load %arg8[%c0_14, %c0_15] : memref<512x128xbf16, #tpu.memory_space<vmem>>, vector<512x128xbf16>
    tpu.vector_store %arg8[%c0_14, %c0_15], %18 {strides = array<i32>} : memref<512x128xbf16, #tpu.memory_space<vmem>>, vector<512x128xbf16>,
    return
  }
  func.func @transform_0(%arg0: i32) -> (i32, i32) {
    %c0_i32 = arith.constant 0 : i32
    %c0_i32_0 = arith.constant 0 : i32
    return %arg0, %c0_i32 : i32, i32
  }
  func.func @transform_1(%arg0: i32) -> (i32, i32) {
    %c0_i32 = arith.constant 0 : i32
    %c0_i32_0 = arith.constant 0 : i32
    return %arg0, %c0_i32 : i32, i32
  }
  func.func @transform_2(%arg0: i32) -> (i32, i32) {
    %c0_i32 = arith.constant 0 : i32
    %c0_i32_0 = arith.constant 0 : i32
    %c0_i32_1 = arith.constant 0 : i32
    return %c0_i32, %c0_i32_0 : i32, i32
  }
  func.func @transform_3(%arg0: i32) -> (i32, i32) {
    %c0_i32 = arith.constant 0 : i32
    %c0_i32_0 = arith.constant 0 : i32
    %c0_i32_1 = arith.constant 0 : i32
    return %c0_i32, %c0_i32_0 : i32, i32
  }
  func.func @transform_4(%arg0: i32) -> (i32, i32) {
    %c0_i32 = arith.constant 0 : i32
    %c0_i32_0 = arith.constant 0 : i32
    %c0_i32_1 = arith.constant 0 : i32
    return %c0_i32, %c0_i32_0 : i32, i32
  }
  func.func @transform_5(%arg0: i32) -> (i32, i32) {
    %c0_i32 = arith.constant 0 : i32
    %c0_i32_0 = arith.constant 0 : i32
    %c0_i32_1 = arith.constant 0 : i32
    return %c0_i32, %c0_i32_0 : i32, i32
  }
  func.func @transform_6(%arg0: i32) -> (i32, i32) {
    %c0_i32 = arith.constant 0 : i32
    %c0_i32_0 = arith.constant 0 : i32
    return %arg0, %c0_i32 : i32, i32
  }
  func.func @transform_7(%arg0: i32) -> (i32, i32) {
    %c0_i32 = arith.constant 0 : i32
    %c0_i32_0 = arith.constant 0 : i32
    return %arg0, %c0_i32 : i32, i32
  }
}

</mosaic_0001>

<bundles_post_ra>
// kernel: tpu_custom_call.1
= control target key start
LH: loop header
LB: loop body
LE: loop exit
PB: predicated region body
PF: predicated region fallthrough
CT: control target
= control target key end

     0   :  { %13 = vsyncpa [#allocation3], 0  ;;  %s2915_s0 = inlined_call_operand.hbm [shape: f32[512,128], index: 0, kind: input, shape index: {}]   ;;  %s2916_s1 = inlined_call_operand.hbm [shape: f32[512,128], index: 1, kind: input, shape index: {}]   ;;  %s2917_s2 = inlined_call_operand.hbm [shape: f32[128,128], index: 2, kind: input, shape index: {}]   ;;  %s2918_s3 = inlined_call_operand.vmem [shape: f32[1,128], index: 3, kind: input, shape index: {}]   ;;  %s2919_s4 = inlined_call_operand.hbm [shape: f32[128,128], index: 4, kind: input, shape index: {}]   ;;  %s2920_s5 = inlined_call_operand.vmem [shape: f32[1,128], index: 5, kind: input, shape index: {}]   ;;  %s2921_s6 = inlined_call_operand.hbm [shape: bf16[512,128], index: 6, kind: output, shape index: {0}]   ;;  %s2922_s7 = inlined_call_operand.hbm [shape: bf16[512,128], index: 7, kind: output, shape index: {1}]  }
   0x1   :  { %14 = vsyncpa [#allocation6], 0 }
   0x2   :  { %15 = vsyncpa [#allocation9], 0 }
   0x3   :  { %16 = vsyncpa [#allocation4], 0 }
   0x4   :  { %17 = vsyncpa [#allocation12], 0  ;;  %s2622_s24 = smov [#allocation5]   ;;  %s2623_s26 = smov [#allocation2]  }
   0x5   :  { %s35_s25 = sshll.u32 %s2622_s24, 4  ;;  %s23_s27 = sshll.u32 %s2623_s26, 4  ;;  %s36_s25 = int_to_ptr.vmem [resolvable:$true] %s35_s25  ;;  %s2672_s27 = int_to_ptr.vmem [resolvable:$true] %s23_s27 }
   0x6   :  { %s2480_s30 = scalar_lea.hbm %s2916_s1, 8192 }
   0x7   :  { %p2481_p0 = scmp.ne.s32.totalorder %s2916_s1, %s2480_s30  ;;  %p2484_p1 = scmp.lt.u32.totalorder %s2480_s30, %s2916_s1 }
   0x9   :  { %p2486_p2 = pnand %p2484_p1, %p2481_p0 }
   0xb   :  { %2489 = shalt.err (!%p2486_p2)
}
   0xc   :  { %s2490_s12 = scalar_lea.vmem %s36_s25, 8192  ;;  %p2495_p4 = scmp.lt.s32.totalorder %s36_s25, %s36_s25 }
   0xd   :  { %p2491_p3 = scmp.ne.s32.totalorder %s36_s25, %s2490_s12  ;;  %p2496_p5 = scmp.lt.s32.totalorder %s2490_s12, %s2490_s12 }
   0xf   :  { %p2497_p6 = por %p2496_p5, %p2495_p4 }
  0x11   :  { %p2498_p7 = pnand %p2497_p6, %p2491_p3 }
  0x13   :  { %2501 = shalt.err (!%p2498_p7)
}
  0x14   :  { %s2624_s13 = smov 128   ;;  %s2625_s14 = smov 8  }
  0x15   :  { %41 = dma.hbm_to_vmem [thread:$0]  %s2916_s1, 8192, %s36_s25, [#allocation6], %s2624_s13, %s2624_s13, %s2625_s14  }
  0x16   :  { %s2502_s19 = scalar_lea.hbm %s2915_s0, 8192 }
  0x17   :  { %p2503_p8 = scmp.ne.s32.totalorder %s2915_s0, %s2502_s19  ;;  %p2506_p9 = scmp.lt.u32.totalorder %s2502_s19, %s2915_s0 }
  0x19   :  { %p2508_p10 = pnand %p2506_p9, %p2503_p8 }
  0x1b   :  { %2511 = shalt.err (!%p2508_p10)
}
  0x1c   :  { %s2512_s24 = scalar_lea.vmem %s2672_s27, 8192  ;;  %p2517_p12 = scmp.lt.s32.totalorder %s2672_s27, %s2672_s27 }
  0x1d   :  { %p2513_p11 = scmp.ne.s32.totalorder %s2672_s27, %s2512_s24  ;;  %p2518_p13 = scmp.lt.s32.totalorder %s2512_s24, %s2512_s24 }
  0x1f   :  { %p2519_p0 = por %p2518_p13, %p2517_p12 }
  0x21   :  { %p2520_p1 = pnand %p2519_p0, %p2513_p11 }
  0x23   :  { %2523 = shalt.err (!%p2520_p1)
}
  0x24   :  { %29 = dma.hbm_to_vmem [thread:$0]  %s2915_s0, 8192, %s2672_s27, [#allocation3], %s2624_s13, %s2624_s13, %s2625_s14  }
  0x25   :  { %s2626_s26 = smov [#allocation7]   ;;  %s2627_s29 = smov [#allocation8]  }
  0x26   :  { %s47_s28 = sshll.u32 %s2626_s26, 4  ;;  %s61_s30 = sshll.u32 %s2627_s29, 4  ;;  %s48_s28 = int_to_ptr.vmem [resolvable:$true] %s47_s28  ;;  %s2709_s30 = int_to_ptr.vmem [resolvable:$true] %s61_s30 }
  0x27   :  { %s2524_s10 = scalar_lea.hbm %s2917_s2, 2048 }
  0x28   :  { %p2525_p2 = scmp.ne.s32.totalorder %s2917_s2, %s2524_s10  ;;  %p2528_p3 = scmp.lt.u32.totalorder %s2524_s10, %s2917_s2 }
  0x2a   :  { %p2530_p4 = pnand %p2528_p3, %p2525_p2 }
  0x2c   :  { %2533 = shalt.err (!%p2530_p4)
}
  0x2d   :  { %s2534_s0 = scalar_lea.vmem %s48_s28, 2048  ;;  %p2539_p6 = scmp.lt.s32.totalorder %s48_s28, %s48_s28 }
  0x2e   :  { %p2535_p5 = scmp.ne.s32.totalorder %s48_s28, %s2534_s0  ;;  %p2540_p7 = scmp.lt.s32.totalorder %s2534_s0, %s2534_s0 }
  0x30   :  { %p2541_p8 = por %p2540_p7, %p2539_p6 }
  0x32   :  { %p2542_p9 = pnand %p2541_p8, %p2535_p5 }
  0x34   :  { %2545 = shalt.err (!%p2542_p9)
}
  0x35   :  { %53 = dma.hbm_to_vmem [thread:$0]  %s2917_s2, 2048, %s48_s28, [#allocation6], %s2624_s13, %s2624_s13, %s2625_s14  }
  0x36   :  { %s2546_s20 = scalar_lea.hbm %s2919_s4, 2048 }
  0x37   :  { %p2547_p10 = scmp.ne.s32.totalorder %s2919_s4, %s2546_s20  ;;  %p2550_p11 = scmp.lt.u32.totalorder %s2546_s20, %s2919_s4 }
  0x39   :  { %p2552_p12 = pnand %p2550_p11, %p2547_p10 }
  0x3b   :  { %2555 = shalt.err (!%p2552_p12)
}
  0x3c   :  { %s2556_s1 = scalar_lea.vmem %s2709_s30, 2048  ;;  %p2561_p0 = scmp.lt.s32.totalorder %s2709_s30, %s2709_s30 }
  0x3d   :  { %p2557_p13 = scmp.ne.s32.totalorder %s2709_s30, %s2556_s1  ;;  %p2562_p1 = scmp.lt.s32.totalorder %s2556_s1, %s2556_s1 }
  0x3f   :  { %p2563_p2 = por %p2562_p1, %p2561_p0 }
  0x41   :  { %p2564_p3 = pnand %p2563_p2, %p2557_p13 }
  0x43   :  { %2567 = shalt.err (!%p2564_p3)
}
  0x44   :  { %67 = dma.hbm_to_vmem [thread:$0]  %s2919_s4, 2048, %s2709_s30, [#allocation9], %s2624_s13, %s2624_s13, %s2625_s14  }
  0x45   :  { %2612 = dma.done.wait [#allocation3], 8192  }
  0x46   :  { %2613 = vsyncadd [#allocation3], 4294959104 }
  0x47   :  { %2614 = dma.done.wait [#allocation6], 10240  }
  0x48   :  { %2615 = vsyncadd [#allocation6], 4294957056 }
  0x49   :  { %2616 = dma.done.wait [#allocation9], 2048  }
  0x4a   :  { %2617 = vsyncadd [#allocation9], 4294965248  ;;  %v275_v0 = vld [vmem:[#allocation7] sm:$0xff]  ;;  %v276_v1 = vld [vmem:[#allocation7 + $0x8] sm:$0xff]  ;;  %s2629_s28 = smov [#allocation11]  }
  0x4b   :  { %v299_v2 = vld [vmem:[#allocation8] sm:$0xff]  ;;  %v291_v3 = vpack.c.bf16 %v276_v1, %v275_v0  ;;  %v300_v4 = vld [vmem:[#allocation8 + $0x8] sm:$0xff]  ;;  %v277_v5 = vld [vmem:[#allocation7 + $0x10] sm:$0xff]  ;;  %s1572_s29 = sshll.u32 %s2629_s28, 4  ;;  %s2884_s29 = int_to_ptr.vmem [resolvable:$true] %s1572_s29 }
  0x4c   :  { %v278_v6 = vld [vmem:[#allocation7 + $0x18] sm:$0xff]  ;;  %v315_v7 = vpack.c.bf16 %v300_v4, %v299_v2  ;;  %v301_v9 = vld [vmem:[#allocation8 + $0x10] sm:$0xff]  ;;  %v279_v12 = vld [vmem:[#allocation7 + $0x20] sm:$0xff] }
  0x4d   :  { %v292_v8 = vpack.c.bf16 %v278_v6, %v277_v5  ;;  %v302_v10 = vld [vmem:[#allocation8 + $0x18] sm:$0xff]  ;;  %2310 = vmatprep.subr.bf16.mxu0 %v291_v3  ;;  %v280_v13 = vld [vmem:[#allocation7 + $0x28] sm:$0xff]  ;;  %v303_v14 = vld [vmem:[#allocation8 + $0x20] sm:$0xff] }
  0x4e   :  { %v316_v11 = vpack.c.bf16 %v302_v10, %v301_v9  ;;  %2390 = vmatprep.subr.bf16.mxu1 %v315_v7  ;;  %2311 = vmatpush3.bf16.xpose.msra.mxu0 %v291_v3  ;;  %v304_v15 = vld [vmem:[#allocation8 + $0x28] sm:$0xff]  ;;  %v293_v16 = vpack.c.bf16 %v280_v13, %v279_v12  ;;  %v83_v18 = vld [vmem:[#allocation2] sm:$0xff]  ;;  %v281_v24 = vld [vmem:[#allocation7 + $0x30] sm:$0xff] }
  0x4f   :  { %2391 = vmatpush3.bf16.xpose.msra.mxu1 %v315_v7  ;;  %2312 = vmatprep.subr.bf16.mxu0 %v292_v8  ;;  %v317_v17 = vpack.c.bf16 %v304_v15, %v303_v14  ;;  %v84_v19 = vld [vmem:[#allocation2 + $0x8] sm:$0xff]  ;;  %v179_v20 = vld [vmem:[#allocation5] sm:$0xff]  ;;  %v282_v25 = vld [vmem:[#allocation7 + $0x38] sm:$0xff] }
  0x50   :  { %2392 = vmatprep.subr.bf16.mxu1 %v316_v11  ;;  %v180_v21 = vld [vmem:[#allocation5 + $0x8] sm:$0xff]  ;;  %v147_v22 = vpack.c.bf16 %v84_v19, %v83_v18  ;;  %v305_v26 = vld [vmem:[#allocation8 + $0x30] sm:$0xff]  ;;  %v306_v27 = vld [vmem:[#allocation8 + $0x38] sm:$0xff]  ;;  %v294_v28 = vpack.c.bf16 %v282_v25, %v281_v24 }
  0x51   :  { %v243_v23 = vpack.c.bf16 %v180_v21, %v179_v20  ;;  %v318_v29 = vpack.c.bf16 %v306_v27, %v305_v26  ;;  %v283_v30 = vld [vmem:[#allocation7 + $0x40] sm:$0xff]  ;;  %v284_v31 = vld [vmem:[#allocation7 + $0x48] sm:$0xff]  ;;  %v285_v36 = vld [vmem:[#allocation7 + $0x50] sm:$0xff] }
  0x52   :  { %2326 = vmatprep.mubr.bf16.mxu0 %v147_v22  ;;  %v307_v32 = vld [vmem:[#allocation8 + $0x40] sm:$0xff]  ;;  %v308_v33 = vld [vmem:[#allocation8 + $0x48] sm:$0xff]  ;;  %v295_v34 = vpack.c.bf16 %v284_v31, %v283_v30  ;;  %v286_v37 = vld [vmem:[#allocation7 + $0x58] sm:$0xff] }
  0x53   :  { %2406 = vmatprep.mubr.bf16.mxu1 %v243_v23  ;;  %v319_v35 = vpack.c.bf16 %v308_v33, %v307_v32  ;;  %v309_v38 = vld [vmem:[#allocation8 + $0x50] sm:$0xff]  ;;  %v310_v39 = vld [vmem:[#allocation8 + $0x58] sm:$0xff]  ;;  %v296_v40 = vpack.c.bf16 %v286_v37, %v285_v36  ;;  %v287_v42 = vld [vmem:[#allocation7 + $0x60] sm:$0xff] }
  0x54   :  { %v320_v41 = vpack.c.bf16 %v310_v39, %v309_v38  ;;  %v288_v43 = vld [vmem:[#allocation7 + $0x68] sm:$0xff]  ;;  %v311_v44 = vld [vmem:[#allocation8 + $0x60] sm:$0xff]  ;;  %v289_v48 = vld [vmem:[#allocation7 + $0x70] sm:$0xff] }
  0x55   :  { %v312_v45 = vld [vmem:[#allocation8 + $0x68] sm:$0xff]  ;;  %v297_v46 = vpack.c.bf16 %v288_v43, %v287_v42  ;;  %v290_v49 = vld [vmem:[#allocation7 + $0x78] sm:$0xff]  ;;  %v313_v50 = vld [vmem:[#allocation8 + $0x70] sm:$0xff] }
  0x56   :  { %2313 = vmatpush3.bf16.xpose.msra.mxu0 %v292_v8  ;;  %v321_v47 = vpack.c.bf16 %v312_v45, %v311_v44  ;;  %v314_v51 = vld [vmem:[#allocation8 + $0x78] sm:$0xff]  ;;  %v298_v52 = vpack.c.bf16 %v290_v49, %v289_v48  ;;  %v85_v54 = vld [vmem:[#allocation2 + $0x10] sm:$0xff]  ;;  %v87_v58 = vld [vmem:[#allocation2 + $0x20] sm:$0xff] }
  0x57   :  { %2393 = vmatpush3.bf16.xpose.msra.mxu1 %v316_v11  ;;  %2314 = vmatprep.subr.bf16.mxu0 %v293_v16  ;;  %v322_v53 = vpack.c.bf16 %v314_v51, %v313_v50  ;;  %v86_v55 = vld [vmem:[#allocation2 + $0x18] sm:$0xff]  ;;  %v181_v56 = vld [vmem:[#allocation5 + $0x10] sm:$0xff]  ;;  %v88_v59 = vld [vmem:[#allocation2 + $0x28] sm:$0xff] }
  0x58   :  { %2394 = vmatprep.subr.bf16.mxu1 %v317_v17  ;;  %v182_v57 = vld [vmem:[#allocation5 + $0x18] sm:$0xff]  ;;  %v183_v60 = vld [vmem:[#allocation5 + $0x20] sm:$0xff]  ;;  %v184_v61 = vld [vmem:[#allocation5 + $0x28] sm:$0xff]  ;;  %v148_v62 = vpack.c.bf16 %v86_v55, %v85_v54  ;;  %v149_v0 = vpack.c.bf16 %v88_v59, %v87_v58 }
  0x59   :  { %v244_v63 = vpack.c.bf16 %v182_v57, %v181_v56  ;;  %v245_v1 = vpack.c.bf16 %v184_v61, %v183_v60  ;;  %v89_v2 = vld [vmem:[#allocation2 + $0x30] sm:$0xff]  ;;  %v90_v3 = vld [vmem:[#allocation2 + $0x38] sm:$0xff]  ;;  %v91_v6 = vld [vmem:[#allocation2 + $0x40] sm:$0xff] }
  0x5a   :  { %v185_v4 = vld [vmem:[#allocation5 + $0x30] sm:$0xff]  ;;  %v186_v5 = vld [vmem:[#allocation5 + $0x38] sm:$0xff]  ;;  %v92_v7 = vld [vmem:[#allocation2 + $0x48] sm:$0xff]  ;;  %v150_v10 = vpack.c.bf16 %v90_v3, %v89_v2 }
  0x5b   :  { %v187_v8 = vld [vmem:[#allocation5 + $0x40] sm:$0xff]  ;;  %v188_v9 = vld [vmem:[#allocation5 + $0x48] sm:$0xff]  ;;  %v246_v11 = vpack.c.bf16 %v186_v5, %v185_v4  ;;  %v151_v12 = vpack.c.bf16 %v92_v7, %v91_v6  ;;  %v93_v14 = vld [vmem:[#allocation2 + $0x50] sm:$0xff] }
  0x5c   :  { %v247_v13 = vpack.c.bf16 %v188_v9, %v187_v8  ;;  %v94_v15 = vld [vmem:[#allocation2 + $0x58] sm:$0xff]  ;;  %v95_v18 = vld [vmem:[#allocation2 + $0x60] sm:$0xff]  ;;  %v96_v19 = vld [vmem:[#allocation2 + $0x68] sm:$0xff] }
  0x5d   :  { %v191_v20 = vld [vmem:[#allocation5 + $0x60] sm:$0xff]  ;;  %v192_v21 = vld [vmem:[#allocation5 + $0x68] sm:$0xff]  ;;  %v152_v22 = vpack.c.bf16 %v94_v15, %v93_v14  ;;  %v153_v24 = vpack.c.bf16 %v96_v19, %v95_v18  ;;  %v97_v26 = vld [vmem:[#allocation2 + $0x70] sm:$0xff] }
  0x5e   :  { %2315 = vmatpush3.bf16.xpose.msra.mxu0 %v293_v16  ;;  %v189_v16 = vld [vmem:[#allocation5 + $0x50] sm:$0xff]  ;;  %v249_v25 = vpack.c.bf16 %v192_v21, %v191_v20  ;;  %v98_v27 = vld [vmem:[#allocation2 + $0x78] sm:$0xff]  ;;  %v99_v30 = vld [vmem:[#allocation2 + $0x80] sm:$0xff] }
  0x5f   :  { %2395 = vmatpush3.bf16.xpose.msra.mxu1 %v317_v17  ;;  %2316 = vmatprep.subr.bf16.mxu0 %v294_v28  ;;  %v190_v17 = vld [vmem:[#allocation5 + $0x58] sm:$0xff]  ;;  %v100_v31 = vld [vmem:[#allocation2 + $0x88] sm:$0xff]  ;;  %v195_v32 = vld [vmem:[#allocation5 + $0x80] sm:$0xff] }
  0x60   :  { %2396 = vmatprep.subr.bf16.mxu1 %v318_v29  ;;  %v248_v23 = vpack.c.bf16 %v190_v17, %v189_v16  ;;  %v196_v33 = vld [vmem:[#allocation5 + $0x88] sm:$0xff]  ;;  %v155_v36 = vpack.c.bf16 %v100_v31, %v99_v30  ;;  %v101_v38 = vld [vmem:[#allocation2 + $0x90] sm:$0xff]  ;;  %v102_v39 = vld [vmem:[#allocation2 + $0x98] sm:$0xff] }
  0x61   :  { %v251_v37 = vpack.c.bf16 %v196_v33, %v195_v32  ;;  %v103_v42 = vld [vmem:[#allocation2 + $0xa0] sm:$0xff]  ;;  %v104_v43 = vld [vmem:[#allocation2 + $0xa8] sm:$0xff]  ;;  %v105_v50 = vld [vmem:[#allocation2 + $0xb0] sm:$0xff] }
  0x62   :  { %v199_v44 = vld [vmem:[#allocation5 + $0xa0] sm:$0xff]  ;;  %v200_v45 = vld [vmem:[#allocation5 + $0xa8] sm:$0xff]  ;;  %v157_v48 = vpack.c.bf16 %v104_v43, %v103_v42  ;;  %v106_v51 = vld [vmem:[#allocation2 + $0xb8] sm:$0xff] }
  0x63   :  { %v253_v49 = vpack.c.bf16 %v200_v45, %v199_v44  ;;  %v107_v54 = vld [vmem:[#allocation2 + $0xc0] sm:$0xff]  ;;  %v108_v55 = vld [vmem:[#allocation2 + $0xc8] sm:$0xff]  ;;  %v158_v58 = vpack.c.bf16 %v106_v51, %v105_v50 }
  0x64   :  { %v203_v56 = vld [vmem:[#allocation5 + $0xc0] sm:$0xff]  ;;  %v204_v57 = vld [vmem:[#allocation5 + $0xc8] sm:$0xff]  ;;  %v159_v60 = vpack.c.bf16 %v108_v55, %v107_v54 }
  0x65   :  { %v255_v61 = vpack.c.bf16 %v204_v57, %v203_v56  ;;  %v111_v2 = vld [vmem:[#allocation2 + $0xe0] sm:$0xff]  ;;  %v112_v3 = vld [vmem:[#allocation2 + $0xe8] sm:$0xff] }
  0x66   :  { %2317 = vmatpush3.bf16.xpose.msra.mxu0 %v294_v28  ;;  %v193_v28 = vld [vmem:[#allocation5 + $0x70] sm:$0xff]  ;;  %v207_v4 = vld [vmem:[#allocation5 + $0xe0] sm:$0xff]  ;;  %v208_v5 = vld [vmem:[#allocation5 + $0xe8] sm:$0xff]  ;;  %v161_v8 = vpack.c.bf16 %v112_v3, %v111_v2 }
  0x67   :  { %2397 = vmatpush3.bf16.xpose.msra.mxu1 %v318_v29  ;;  %2318 = vmatprep.subr.bf16.mxu0 %v295_v34  ;;  %v194_v29 = vld [vmem:[#allocation5 + $0x78] sm:$0xff]  ;;  %v257_v9 = vpack.c.bf16 %v208_v5, %v207_v4  ;;  %v115_v14 = vld [vmem:[#allocation2 + $0x100] sm:$0xff]  ;;  %v116_v15 = vld [vmem:[#allocation2 + $0x108] sm:$0xff] }
  0x68   :  { %2398 = vmatprep.subr.bf16.mxu1 %v319_v35  ;;  %v211_v16 = vld [vmem:[#allocation5 + $0x100] sm:$0xff]  ;;  %v212_v17 = vld [vmem:[#allocation5 + $0x108] sm:$0xff]  ;;  %v163_v20 = vpack.c.bf16 %v116_v15, %v115_v14 }
  0x69   :  { %v259_v21 = vpack.c.bf16 %v212_v17, %v211_v16  ;;  %v127_v50 = vld [vmem:[#allocation2 + $0x160] sm:$0xff]  ;;  %v128_v51 = vld [vmem:[#allocation2 + $0x168] sm:$0xff] }
  0x6a   :  { %v169_v56 = vpack.c.bf16 %v128_v51, %v127_v50  ;;  %v2754_v51 = vld [vmem:[%s2920_s5] ss:$0 sm:$0xff] }
  0x6e   :  { %2319 = vmatpush3.bf16.xpose.msra.mxu0 %v295_v34  ;;  %v154_v34 = vpack.c.bf16 %v98_v27, %v97_v26  ;;  %v119_v26 = vld [vmem:[#allocation2 + $0x120] sm:$0xff]  ;;  %v120_v27 = vld [vmem:[#allocation2 + $0x128] sm:$0xff] }
  0x6f   :  { %2399 = vmatpush3.bf16.xpose.msra.mxu1 %v319_v35  ;;  %2320 = vmatprep.subr.bf16.mxu0 %v296_v40  ;;  %v250_v35 = vpack.c.bf16 %v194_v29, %v193_v28  ;;  %v215_v28 = vld [vmem:[#allocation5 + $0x120] sm:$0xff]  ;;  %v216_v29 = vld [vmem:[#allocation5 + $0x128] sm:$0xff]  ;;  %v165_v32 = vpack.c.bf16 %v120_v27, %v119_v26 }
  0x70   :  { %2400 = vmatprep.subr.bf16.mxu1 %v320_v41  ;;  %v261_v33 = vpack.c.bf16 %v216_v29, %v215_v28 }
  0x76   :  { %2321 = vmatpush3.bf16.xpose.msra.mxu0 %v296_v40  ;;  %v197_v40 = vld [vmem:[#allocation5 + $0x90] sm:$0xff] }
  0x77   :  { %2401 = vmatpush3.bf16.xpose.msra.mxu1 %v320_v41  ;;  %2322 = vmatprep.subr.bf16.mxu0 %v297_v46  ;;  %v198_v41 = vld [vmem:[#allocation5 + $0x98] sm:$0xff] }
  0x78   :  { %2402 = vmatprep.subr.bf16.mxu1 %v321_v47 }
  0x7e   :  { %2323 = vmatpush3.bf16.xpose.msra.mxu0 %v297_v46  ;;  %v156_v46 = vpack.c.bf16 %v102_v39, %v101_v38  ;;  %v123_v38 = vld [vmem:[#allocation2 + $0x140] sm:$0xff]  ;;  %v124_v39 = vld [vmem:[#allocation2 + $0x148] sm:$0xff] }
  0x7f   :  { %2403 = vmatpush3.bf16.xpose.msra.mxu1 %v321_v47  ;;  %2324 = vmatprep.subr.bf16.mxu0 %v298_v52  ;;  %v252_v47 = vpack.c.bf16 %v198_v41, %v197_v40  ;;  %v219_v40 = vld [vmem:[#allocation5 + $0x140] sm:$0xff]  ;;  %v220_v41 = vld [vmem:[#allocation5 + $0x148] sm:$0xff]  ;;  %v167_v44 = vpack.c.bf16 %v124_v39, %v123_v38 }
  0x80   :  { %2404 = vmatprep.subr.bf16.mxu1 %v322_v53  ;;  %v263_v45 = vpack.c.bf16 %v220_v41, %v219_v40 }
  0x86   :  { %2325 = vmatpush3.bf16.xpose.msra.mxu0 %v298_v52  ;;  %v201_v52 = vld [vmem:[#allocation5 + $0xb0] sm:$0xff] }
  0x87   :  { %2405 = vmatpush3.bf16.xpose.msra.mxu1 %v322_v53  ;;  %v202_v53 = vld [vmem:[#allocation5 + $0xb8] sm:$0xff] }
  0x88   :  { %v254_v59 = vpack.c.bf16 %v202_v53, %v201_v52  ;;  %v223_v52 = vld [vmem:[#allocation5 + $0x160] sm:$0xff]  ;;  %v224_v53 = vld [vmem:[#allocation5 + $0x168] sm:$0xff] }
  0x89   :  { %v265_v57 = vpack.c.bf16 %v224_v53, %v223_v52 }
  0x8d   :  { %2327 = vmatmul.mubr.bf16.vlgmr.msra.gmra.mrb[0].mxu0 %v148_v62  ;;  %v109_v62 = vld [vmem:[#allocation2 + $0xd0] sm:$0xff] }
  0x8e   :  { %2407 = vmatmul.mubr.bf16.vlgmr.msra.gmra.mrb[0].mxu1 %v244_v63  ;;  %2330 = vmatprep.mubr.bf16.mxu0 %v149_v0  ;;  %v110_v63 = vld [vmem:[#allocation2 + $0xd8] sm:$0xff]  ;;  %v205_v0 = vld [vmem:[#allocation5 + $0xd0] sm:$0xff] }
  0x8f   :  { %2410 = vmatprep.mubr.bf16.mxu1 %v245_v1  ;;  %v206_v1 = vld [vmem:[#allocation5 + $0xd8] sm:$0xff]  ;;  %v160_v6 = vpack.c.bf16 %v110_v63, %v109_v62  ;;  %v131_v62 = vld [vmem:[#allocation2 + $0x180] sm:$0xff]  ;;  %v132_v63 = vld [vmem:[#allocation2 + $0x188] sm:$0xff] }
  0x90   :  { %v256_v7 = vpack.c.bf16 %v206_v1, %v205_v0  ;;  %v227_v0 = vld [vmem:[#allocation5 + $0x180] sm:$0xff]  ;;  %v228_v1 = vld [vmem:[#allocation5 + $0x188] sm:$0xff]  ;;  %v171_v4 = vpack.c.bf16 %v132_v63, %v131_v62 }
  0x91   :  { %v267_v5 = vpack.c.bf16 %v228_v1, %v227_v0 }
  0x95   :  { %2331 = vmatmul.mubr.bf16.gmra.mrb[4].mxu0 %v150_v10  ;;  %v113_v10 = vld [vmem:[#allocation2 + $0xf0] sm:$0xff] }
  0x96   :  { %2411 = vmatmul.mubr.bf16.gmra.mrb[4].mxu1 %v246_v11  ;;  %2334 = vmatprep.mubr.bf16.mxu0 %v151_v12  ;;  %v114_v11 = vld [vmem:[#allocation2 + $0xf8] sm:$0xff]  ;;  %v209_v12 = vld [vmem:[#allocation5 + $0xf0] sm:$0xff] }
  0x97   :  { %2414 = vmatprep.mubr.bf16.mxu1 %v247_v13  ;;  %v210_v13 = vld [vmem:[#allocation5 + $0xf8] sm:$0xff]  ;;  %v162_v18 = vpack.c.bf16 %v114_v11, %v113_v10  ;;  %v135_v10 = vld [vmem:[#allocation2 + $0x1a0] sm:$0xff]  ;;  %v136_v11 = vld [vmem:[#allocation2 + $0x1a8] sm:$0xff] }
  0x98   :  { %v258_v19 = vpack.c.bf16 %v210_v13, %v209_v12  ;;  %v231_v12 = vld [vmem:[#allocation5 + $0x1a0] sm:$0xff]  ;;  %v232_v13 = vld [vmem:[#allocation5 + $0x1a8] sm:$0xff]  ;;  %v173_v16 = vpack.c.bf16 %v136_v11, %v135_v10 }
  0x99   :  { %v269_v17 = vpack.c.bf16 %v232_v13, %v231_v12 }
  0x9d   :  { %2335 = vmatmul.mubr.bf16.gmra.mrb[8].mxu0 %v152_v22  ;;  %v117_v22 = vld [vmem:[#allocation2 + $0x110] sm:$0xff] }
  0x9e   :  { %2415 = vmatmul.mubr.bf16.gmra.mrb[8].mxu1 %v248_v23  ;;  %2338 = vmatprep.mubr.bf16.mxu0 %v153_v24  ;;  %v118_v23 = vld [vmem:[#allocation2 + $0x118] sm:$0xff]  ;;  %v213_v24 = vld [vmem:[#allocation5 + $0x110] sm:$0xff] }
  0x9f   :  { %2418 = vmatprep.mubr.bf16.mxu1 %v249_v25  ;;  %v214_v25 = vld [vmem:[#allocation5 + $0x118] sm:$0xff]  ;;  %v164_v30 = vpack.c.bf16 %v118_v23, %v117_v22  ;;  %v139_v22 = vld [vmem:[#allocation2 + $0x1c0] sm:$0xff]  ;;  %v140_v23 = vld [vmem:[#allocation2 + $0x1c8] sm:$0xff] }
  0xa0   :  { %v260_v31 = vpack.c.bf16 %v214_v25, %v213_v24  ;;  %v235_v24 = vld [vmem:[#allocation5 + $0x1c0] sm:$0xff]  ;;  %v236_v25 = vld [vmem:[#allocation5 + $0x1c8] sm:$0xff]  ;;  %v175_v28 = vpack.c.bf16 %v140_v23, %v139_v22 }
  0xa1   :  { %v271_v29 = vpack.c.bf16 %v236_v25, %v235_v24 }
  0xa5   :  { %2339 = vmatmul.mubr.bf16.gmra.mrb[12].mxu0 %v154_v34  ;;  %v121_v34 = vld [vmem:[#allocation2 + $0x130] sm:$0xff] }
  0xa6   :  { %2419 = vmatmul.mubr.bf16.gmra.mrb[12].mxu1 %v250_v35  ;;  %2342 = vmatprep.mubr.bf16.mxu0 %v155_v36  ;;  %v122_v35 = vld [vmem:[#allocation2 + $0x138] sm:$0xff]  ;;  %v217_v36 = vld [vmem:[#allocation5 + $0x130] sm:$0xff] }
  0xa7   :  { %2422 = vmatprep.mubr.bf16.mxu1 %v251_v37  ;;  %v218_v37 = vld [vmem:[#allocation5 + $0x138] sm:$0xff]  ;;  %v166_v42 = vpack.c.bf16 %v122_v35, %v121_v34  ;;  %v143_v34 = vld [vmem:[#allocation2 + $0x1e0] sm:$0xff]  ;;  %v144_v35 = vld [vmem:[#allocation2 + $0x1e8] sm:$0xff] }
  0xa8   :  { %v262_v43 = vpack.c.bf16 %v218_v37, %v217_v36  ;;  %v239_v36 = vld [vmem:[#allocation5 + $0x1e0] sm:$0xff]  ;;  %v240_v37 = vld [vmem:[#allocation5 + $0x1e8] sm:$0xff]  ;;  %v177_v40 = vpack.c.bf16 %v144_v35, %v143_v34 }
  0xa9   :  { %v273_v41 = vpack.c.bf16 %v240_v37, %v239_v36 }
  0xad   :  { %2343 = vmatmul.mubr.bf16.gmra.mrb[16].mxu0 %v156_v46  ;;  %v125_v46 = vld [vmem:[#allocation2 + $0x150] sm:$0xff] }
  0xae   :  { %2423 = vmatmul.mubr.bf16.gmra.mrb[16].mxu1 %v252_v47  ;;  %2346 = vmatprep.mubr.bf16.mxu0 %v157_v48  ;;  %v126_v47 = vld [vmem:[#allocation2 + $0x158] sm:$0xff]  ;;  %v221_v48 = vld [vmem:[#allocation5 + $0x150] sm:$0xff] }
  0xaf   :  { %2426 = vmatprep.mubr.bf16.mxu1 %v253_v49  ;;  %v222_v49 = vld [vmem:[#allocation5 + $0x158] sm:$0xff]  ;;  %v168_v54 = vpack.c.bf16 %v126_v47, %v125_v46 }
  0xb0   :  { %v264_v55 = vpack.c.bf16 %v222_v49, %v221_v48  ;;  %v2749_v49 = vld [vmem:[%s2918_s3] ss:$0 sm:$0xff]  ;;  %s2628_s3 = smov [#allocation10]  }
  0xb1   :  { %s1560_s5 = sshll.u32 %s2628_s3, 4  ;;  %s1561_s5 = int_to_ptr.vmem [resolvable:$true] %s1560_s5 }
  0xb2   :  { %s2568_s30 = scalar_lea.vmem %s1561_s5, 4096  ;;  %p2573_p5 = scmp.lt.s32.totalorder %s1561_s5, %s1561_s5 }
  0xb3   :  { %p2569_p4 = scmp.ne.s32.totalorder %s1561_s5, %s2568_s30  ;;  %p2574_p6 = scmp.lt.s32.totalorder %s2568_s30, %s2568_s30 }
  0xb5   :  { %2347 = vmatmul.mubr.bf16.gmra.mrb[20].mxu0 %v158_v58  ;;  %v129_v58 = vld [vmem:[#allocation2 + $0x170] sm:$0xff]  ;;  %p2575_p7 = por %p2574_p6, %p2573_p5 }
  0xb6   :  { %2427 = vmatmul.mubr.bf16.gmra.mrb[20].mxu1 %v254_v59  ;;  %2350 = vmatprep.mubr.bf16.mxu0 %v159_v60  ;;  %v130_v59 = vld [vmem:[#allocation2 + $0x178] sm:$0xff]  ;;  %v225_v60 = vld [vmem:[#allocation5 + $0x170] sm:$0xff] }
  0xb7   :  { %2430 = vmatprep.mubr.bf16.mxu1 %v255_v61  ;;  %v226_v61 = vld [vmem:[#allocation5 + $0x178] sm:$0xff]  ;;  %v170_v2 = vpack.c.bf16 %v130_v59, %v129_v58  ;;  %p2576_p8 = pnand %p2575_p7, %p2569_p4 }
  0xb8   :  { %v266_v3 = vpack.c.bf16 %v226_v61, %v225_v60 }
  0xbd   :  { %2351 = vmatmul.mubr.bf16.gmra.mrb[24].mxu0 %v160_v6  ;;  %v133_v6 = vld [vmem:[#allocation2 + $0x190] sm:$0xff] }
  0xbe   :  { %2431 = vmatmul.mubr.bf16.gmra.mrb[24].mxu1 %v256_v7  ;;  %2354 = vmatprep.mubr.bf16.mxu0 %v161_v8  ;;  %v134_v7 = vld [vmem:[#allocation2 + $0x198] sm:$0xff]  ;;  %v229_v8 = vld [vmem:[#allocation5 + $0x190] sm:$0xff] }
  0xbf   :  { %2434 = vmatprep.mubr.bf16.mxu1 %v257_v9  ;;  %v230_v9 = vld [vmem:[#allocation5 + $0x198] sm:$0xff]  ;;  %v172_v14 = vpack.c.bf16 %v134_v7, %v133_v6 }
  0xc0   :  { %v268_v15 = vpack.c.bf16 %v230_v9, %v229_v8 }
  0xc5   :  { %2355 = vmatmul.mubr.bf16.gmra.mrb[28].mxu0 %v162_v18  ;;  %v137_v18 = vld [vmem:[#allocation2 + $0x1b0] sm:$0xff] }
  0xc6   :  { %2435 = vmatmul.mubr.bf16.gmra.mrb[28].mxu1 %v258_v19  ;;  %2358 = vmatprep.mubr.bf16.mxu0 %v163_v20  ;;  %v138_v19 = vld [vmem:[#allocation2 + $0x1b8] sm:$0xff]  ;;  %v233_v20 = vld [vmem:[#allocation5 + $0x1b0] sm:$0xff] }
  0xc7   :  { %2438 = vmatprep.mubr.bf16.mxu1 %v259_v21  ;;  %v234_v21 = vld [vmem:[#allocation5 + $0x1b8] sm:$0xff]  ;;  %v174_v26 = vpack.c.bf16 %v138_v19, %v137_v18 }
  0xc8   :  { %v270_v27 = vpack.c.bf16 %v234_v21, %v233_v20 }
  0xcd   :  { %2359 = vmatmul.mubr.bf16.gmra.mrb[32].mxu0 %v164_v30  ;;  %v141_v30 = vld [vmem:[#allocation2 + $0x1d0] sm:$0xff] }
  0xce   :  { %2439 = vmatmul.mubr.bf16.gmra.mrb[32].mxu1 %v260_v31  ;;  %2362 = vmatprep.mubr.bf16.mxu0 %v165_v32  ;;  %v142_v31 = vld [vmem:[#allocation2 + $0x1d8] sm:$0xff]  ;;  %v237_v32 = vld [vmem:[#allocation5 + $0x1d0] sm:$0xff] }
  0xcf   :  { %2442 = vmatprep.mubr.bf16.mxu1 %v261_v33  ;;  %v238_v33 = vld [vmem:[#allocation5 + $0x1d8] sm:$0xff]  ;;  %v176_v38 = vpack.c.bf16 %v142_v31, %v141_v30 }
  0xd0   :  { %v272_v39 = vpack.c.bf16 %v238_v33, %v237_v32 }
  0xd5   :  { %2363 = vmatmul.mubr.bf16.gmra.mrb[36].mxu0 %v166_v42  ;;  %v145_v42 = vld [vmem:[#allocation2 + $0x1f0] sm:$0xff] }
  0xd6   :  { %2443 = vmatmul.mubr.bf16.gmra.mrb[36].mxu1 %v262_v43  ;;  %2366 = vmatprep.mubr.bf16.mxu0 %v167_v44  ;;  %v146_v43 = vld [vmem:[#allocation2 + $0x1f8] sm:$0xff]  ;;  %v241_v44 = vld [vmem:[#allocation5 + $0x1f0] sm:$0xff] }
  0xd7   :  { %2446 = vmatprep.mubr.bf16.mxu1 %v263_v45  ;;  %v242_v45 = vld [vmem:[#allocation5 + $0x1f8] sm:$0xff]  ;;  %v178_v46 = vpack.c.bf16 %v146_v43, %v145_v42 }
  0xd8   :  { %v274_v47 = vpack.c.bf16 %v242_v45, %v241_v44 }
  0xdd   :  { %2367 = vmatmul.mubr.bf16.gmra.mrb[40].mxu0 %v168_v54 }
  0xde   :  { %2447 = vmatmul.mubr.bf16.gmra.mrb[40].mxu1 %v264_v55  ;;  %2370 = vmatprep.mubr.bf16.mxu0 %v169_v56 }
  0xdf   :  { %2450 = vmatprep.mubr.bf16.mxu1 %v265_v57 }
  0xe5   :  { %2371 = vmatmul.mubr.bf16.gmra.mrb[44].mxu0 %v170_v2 }
  0xe6   :  { %2451 = vmatmul.mubr.bf16.gmra.mrb[44].mxu1 %v266_v3  ;;  %2374 = vmatprep.mubr.bf16.mxu0 %v171_v4 }
  0xe7   :  { %2454 = vmatprep.mubr.bf16.mxu1 %v267_v5 }
  0xed   :  { %2375 = vmatmul.mubr.bf16.gmra.mrb[48].mxu0 %v172_v14 }
  0xee   :  { %2455 = vmatmul.mubr.bf16.gmra.mrb[48].mxu1 %v268_v15  ;;  %2378 = vmatprep.mubr.bf16.mxu0 %v173_v16 }
  0xef   :  { %2458 = vmatprep.mubr.bf16.mxu1 %v269_v17 }
  0xf5   :  { %2379 = vmatmul.mubr.bf16.gmra.mrb[52].mxu0 %v174_v26 }
  0xf6   :  { %2459 = vmatmul.mubr.bf16.gmra.mrb[52].mxu1 %v270_v27  ;;  %2382 = vmatprep.mubr.bf16.mxu0 %v175_v28 }
  0xf7   :  { %2462 = vmatprep.mubr.bf16.mxu1 %v271_v29 }
  0xfd   :  { %2383 = vmatmul.mubr.bf16.gmra.mrb[56].mxu0 %v176_v38 }
  0xfe   :  { %2463 = vmatmul.mubr.bf16.gmra.mrb[56].mxu1 %v272_v39  ;;  %2386 = vmatprep.mubr.bf16.mxu0 %v177_v40 }
  0xff   :  { %2466 = vmatprep.mubr.bf16.mxu1 %v273_v41 }
 0x105   :  { %2387 = vmatmul.mubr.bf16.gmra.mrb[60].mxu0 %v178_v46 }
 0x106   :  { %2467 = vmatmul.mubr.bf16.gmra.mrb[60].mxu1 %v274_v47 }
 0x160   :  { %v2328_v48 = vpop.f32.mrb[0].mxu0 }
 0x161   :  { %v2408_v50 = vpop.f32.mrb[0].mxu1  ;;  %v364_v52 = vpop.f32.mrb[1].mxu0  ;;  %v373_v55 = vadd.f32 %v2328_v48, %v2749_v49 }
 0x162   :  { %v660_v53 = vpop.f32.mrb[1].mxu1  ;;  %v2329_v54 = vpop.f32.mrb[2].mxu0  ;;  %v669_v59 = vadd.f32 %v2408_v50, %v2754_v51  ;;  %v365_v60 = vadd.f32 %v2749_v49, %v364_v52 }
 0x163   :  { %v376_v56 = vadd.f32 %v2329_v54, %v2749_v49  ;;  %v2409_v57 = vpop.f32.mrb[2].mxu1  ;;  %v367_v58 = vpop.f32.mrb[3].mxu0  ;;  %v661_v0 = vadd.f32 %v2754_v51, %v660_v53 }
 0x164   :  { %v672_v61 = vadd.f32 %v2409_v57, %v2754_v51  ;;  %v368_v62 = vadd.f32 %v2749_v49, %v367_v58  ;;  %v663_v63 = vpop.f32.mrb[3].mxu1 }
 0x165   :  { %v1856_v1 = vpack.c.bf16 %v376_v56, %v373_v55  ;;  %v664_v2 = vadd.f32 %v2754_v51, %v663_v63 }
 0x166   :  { %v2016_v3 = vpack.c.bf16 %v672_v61, %v669_v59  ;;  %v1851_v4 = vpack.c.bf16 %v368_v62, %v365_v60 }
 0x167   :  { %2168 = vst [vmem:[#allocation10 + $0x8] sm:$0xff] %v1856_v1   ;;  %v2011_v5 = vpack.c.bf16 %v664_v2, %v661_v0 }
 0x168   :  { %2199 = vst [vmem:[#allocation11 + $0x8] sm:$0xff] %v2016_v3   ;;  %1852 = vst [vmem:[#allocation10] sm:$0xff] %v1851_v4   ;;  %v2332_v6 = vpop.f32.mrb[4].mxu0 }
 0x169   :  { %2012 = vst [vmem:[#allocation11] sm:$0xff] %v2011_v5   ;;  %v2412_v7 = vpop.f32.mrb[4].mxu1  ;;  %v380_v8 = vpop.f32.mrb[5].mxu0  ;;  %v389_v11 = vadd.f32 %v2332_v6, %v2749_v49 }
 0x16a   :  { %v676_v9 = vpop.f32.mrb[5].mxu1  ;;  %v2333_v10 = vpop.f32.mrb[6].mxu0  ;;  %v685_v15 = vadd.f32 %v2412_v7, %v2754_v51  ;;  %v381_v16 = vadd.f32 %v2749_v49, %v380_v8 }
 0x16b   :  { %v392_v12 = vadd.f32 %v2333_v10, %v2749_v49  ;;  %v2413_v13 = vpop.f32.mrb[6].mxu1  ;;  %v383_v14 = vpop.f32.mrb[7].mxu0  ;;  %v677_v20 = vadd.f32 %v2754_v51, %v676_v9 }
 0x16c   :  { %v688_v17 = vadd.f32 %v2413_v13, %v2754_v51  ;;  %v384_v18 = vadd.f32 %v2749_v49, %v383_v14  ;;  %v679_v19 = vpop.f32.mrb[7].mxu1 }
 0x16d   :  { %v1866_v21 = vpack.c.bf16 %v392_v12, %v389_v11  ;;  %v680_v22 = vadd.f32 %v2754_v51, %v679_v19 }
 0x16e   :  { %v2026_v23 = vpack.c.bf16 %v688_v17, %v685_v15  ;;  %v1861_v24 = vpack.c.bf16 %v384_v18, %v381_v16 }
 0x16f   :  { %2170 = vst [vmem:[#allocation10 + $0x18] sm:$0xff] %v1866_v21   ;;  %v2021_v25 = vpack.c.bf16 %v680_v22, %v677_v20 }
 0x170   :  { %2201 = vst [vmem:[#allocation11 + $0x18] sm:$0xff] %v2026_v23   ;;  %2169 = vst [vmem:[#allocation10 + $0x10] sm:$0xff] %v1861_v24   ;;  %v2336_v26 = vpop.f32.mrb[8].mxu0 }
 0x171   :  { %2200 = vst [vmem:[#allocation11 + $0x10] sm:$0xff] %v2021_v25   ;;  %v2416_v27 = vpop.f32.mrb[8].mxu1  ;;  %v396_v28 = vpop.f32.mrb[9].mxu0  ;;  %v405_v31 = vadd.f32 %v2336_v26, %v2749_v49 }
 0x172   :  { %v692_v29 = vpop.f32.mrb[9].mxu1  ;;  %v2337_v30 = vpop.f32.mrb[10].mxu0  ;;  %v701_v35 = vadd.f32 %v2416_v27, %v2754_v51  ;;  %v397_v36 = vadd.f32 %v2749_v49, %v396_v28 }
 0x173   :  { %v408_v32 = vadd.f32 %v2337_v30, %v2749_v49  ;;  %v2417_v33 = vpop.f32.mrb[10].mxu1  ;;  %v399_v34 = vpop.f32.mrb[11].mxu0  ;;  %v693_v40 = vadd.f32 %v2754_v51, %v692_v29 }
 0x174   :  { %v704_v37 = vadd.f32 %v2417_v33, %v2754_v51  ;;  %v400_v38 = vadd.f32 %v2749_v49, %v399_v34  ;;  %v695_v39 = vpop.f32.mrb[11].mxu1 }
 0x175   :  { %v1876_v41 = vpack.c.bf16 %v408_v32, %v405_v31  ;;  %v696_v42 = vadd.f32 %v2754_v51, %v695_v39 }
 0x176   :  { %v2036_v43 = vpack.c.bf16 %v704_v37, %v701_v35  ;;  %v1871_v44 = vpack.c.bf16 %v400_v38, %v397_v36 }
 0x177   :  { %2172 = vst [vmem:[#allocation10 + $0x28] sm:$0xff] %v1876_v41   ;;  %v2031_v45 = vpack.c.bf16 %v696_v42, %v693_v40 }
 0x178   :  { %2203 = vst [vmem:[#allocation11 + $0x28] sm:$0xff] %v2036_v43   ;;  %2171 = vst [vmem:[#allocation10 + $0x20] sm:$0xff] %v1871_v44   ;;  %v2340_v46 = vpop.f32.mrb[12].mxu0 }
 0x179   :  { %2202 = vst [vmem:[#allocation11 + $0x20] sm:$0xff] %v2031_v45   ;;  %v2420_v47 = vpop.f32.mrb[12].mxu1  ;;  %v412_v48 = vpop.f32.mrb[13].mxu0  ;;  %v421_v53 = vadd.f32 %v2340_v46, %v2749_v49 }
 0x17a   :  { %v708_v50 = vpop.f32.mrb[13].mxu1  ;;  %v2341_v52 = vpop.f32.mrb[14].mxu0  ;;  %v717_v57 = vadd.f32 %v2420_v47, %v2754_v51  ;;  %v413_v58 = vadd.f32 %v2749_v49, %v412_v48 }
 0x17b   :  { %v424_v54 = vadd.f32 %v2341_v52, %v2749_v49  ;;  %v2421_v55 = vpop.f32.mrb[14].mxu1  ;;  %v415_v56 = vpop.f32.mrb[15].mxu0  ;;  %v709_v62 = vadd.f32 %v2754_v51, %v708_v50 }
 0x17c   :  { %v720_v59 = vadd.f32 %v2421_v55, %v2754_v51  ;;  %v416_v60 = vadd.f32 %v2749_v49, %v415_v56  ;;  %v711_v61 = vpop.f32.mrb[15].mxu1 }
 0x17d   :  { %v1886_v63 = vpack.c.bf16 %v424_v54, %v421_v53  ;;  %v712_v0 = vadd.f32 %v2754_v51, %v711_v61 }
 0x17e   :  { %v2046_v1 = vpack.c.bf16 %v720_v59, %v717_v57  ;;  %v1881_v2 = vpack.c.bf16 %v416_v60, %v413_v58 }
 0x17f   :  { %2174 = vst [vmem:[#allocation10 + $0x38] sm:$0xff] %v1886_v63   ;;  %v2041_v3 = vpack.c.bf16 %v712_v0, %v709_v62 }
 0x180   :  { %2205 = vst [vmem:[#allocation11 + $0x38] sm:$0xff] %v2046_v1   ;;  %2173 = vst [vmem:[#allocation10 + $0x30] sm:$0xff] %v1881_v2   ;;  %v2344_v4 = vpop.f32.mrb[16].mxu0 }
 0x181   :  { %2204 = vst [vmem:[#allocation11 + $0x30] sm:$0xff] %v2041_v3   ;;  %v2424_v5 = vpop.f32.mrb[16].mxu1  ;;  %v428_v6 = vpop.f32.mrb[17].mxu0  ;;  %v437_v9 = vadd.f32 %v2344_v4, %v2749_v49 }
 0x182   :  { %v724_v7 = vpop.f32.mrb[17].mxu1  ;;  %v2345_v8 = vpop.f32.mrb[18].mxu0  ;;  %v733_v13 = vadd.f32 %v2424_v5, %v2754_v51  ;;  %v429_v14 = vadd.f32 %v2749_v49, %v428_v6 }
 0x183   :  { %v440_v10 = vadd.f32 %v2345_v8, %v2749_v49  ;;  %v2425_v11 = vpop.f32.mrb[18].mxu1  ;;  %v431_v12 = vpop.f32.mrb[19].mxu0  ;;  %v725_v18 = vadd.f32 %v2754_v51, %v724_v7 }
 0x184   :  { %v736_v15 = vadd.f32 %v2425_v11, %v2754_v51  ;;  %v432_v16 = vadd.f32 %v2749_v49, %v431_v12  ;;  %v727_v17 = vpop.f32.mrb[19].mxu1 }
 0x185   :  { %v1896_v19 = vpack.c.bf16 %v440_v10, %v437_v9  ;;  %v728_v20 = vadd.f32 %v2754_v51, %v727_v17 }
 0x186   :  { %v2056_v21 = vpack.c.bf16 %v736_v15, %v733_v13  ;;  %v1891_v22 = vpack.c.bf16 %v432_v16, %v429_v14 }
 0x187   :  { %2176 = vst [vmem:[#allocation10 + $0x48] sm:$0xff] %v1896_v19   ;;  %v2051_v23 = vpack.c.bf16 %v728_v20, %v725_v18 }
 0x188   :  { %2207 = vst [vmem:[#allocation11 + $0x48] sm:$0xff] %v2056_v21   ;;  %2175 = vst [vmem:[#allocation10 + $0x40] sm:$0xff] %v1891_v22   ;;  %v2348_v24 = vpop.f32.mrb[20].mxu0 }
 0x189   :  { %2206 = vst [vmem:[#allocation11 + $0x40] sm:$0xff] %v2051_v23   ;;  %v2428_v25 = vpop.f32.mrb[20].mxu1  ;;  %v444_v26 = vpop.f32.mrb[21].mxu0  ;;  %v453_v29 = vadd.f32 %v2348_v24, %v2749_v49 }
 0x18a   :  { %v740_v27 = vpop.f32.mrb[21].mxu1  ;;  %v2349_v28 = vpop.f32.mrb[22].mxu0  ;;  %v749_v33 = vadd.f32 %v2428_v25, %v2754_v51  ;;  %v445_v34 = vadd.f32 %v2749_v49, %v444_v26 }
 0x18b   :  { %v456_v30 = vadd.f32 %v2349_v28, %v2749_v49  ;;  %v2429_v31 = vpop.f32.mrb[22].mxu1  ;;  %v447_v32 = vpop.f32.mrb[23].mxu0  ;;  %v741_v38 = vadd.f32 %v2754_v51, %v740_v27 }
 0x18c   :  { %v752_v35 = vadd.f32 %v2429_v31, %v2754_v51  ;;  %v448_v36 = vadd.f32 %v2749_v49, %v447_v32  ;;  %v743_v37 = vpop.f32.mrb[23].mxu1 }
 0x18d   :  { %v1906_v39 = vpack.c.bf16 %v456_v30, %v453_v29  ;;  %v744_v40 = vadd.f32 %v2754_v51, %v743_v37 }
 0x18e   :  { %v2066_v41 = vpack.c.bf16 %v752_v35, %v749_v33  ;;  %v1901_v42 = vpack.c.bf16 %v448_v36, %v445_v34 }
 0x18f   :  { %2178 = vst [vmem:[#allocation10 + $0x58] sm:$0xff] %v1906_v39   ;;  %v2061_v43 = vpack.c.bf16 %v744_v40, %v741_v38 }
 0x190   :  { %2209 = vst [vmem:[#allocation11 + $0x58] sm:$0xff] %v2066_v41   ;;  %2177 = vst [vmem:[#allocation10 + $0x50] sm:$0xff] %v1901_v42   ;;  %v2352_v44 = vpop.f32.mrb[24].mxu0 }
 0x191   :  { %2208 = vst [vmem:[#allocation11 + $0x50] sm:$0xff] %v2061_v43   ;;  %v2432_v45 = vpop.f32.mrb[24].mxu1  ;;  %v460_v46 = vpop.f32.mrb[25].mxu0  ;;  %v469_v50 = vadd.f32 %v2352_v44, %v2749_v49 }
 0x192   :  { %v756_v47 = vpop.f32.mrb[25].mxu1  ;;  %v2353_v48 = vpop.f32.mrb[26].mxu0  ;;  %v765_v55 = vadd.f32 %v2432_v45, %v2754_v51  ;;  %v461_v56 = vadd.f32 %v2749_v49, %v460_v46 }
 0x193   :  { %v472_v52 = vadd.f32 %v2353_v48, %v2749_v49  ;;  %v2433_v53 = vpop.f32.mrb[26].mxu1  ;;  %v463_v54 = vpop.f32.mrb[27].mxu0  ;;  %v757_v60 = vadd.f32 %v2754_v51, %v756_v47 }
 0x194   :  { %v768_v57 = vadd.f32 %v2433_v53, %v2754_v51  ;;  %v464_v58 = vadd.f32 %v2749_v49, %v463_v54  ;;  %v759_v59 = vpop.f32.mrb[27].mxu1 }
 0x195   :  { %v1916_v61 = vpack.c.bf16 %v472_v52, %v469_v50  ;;  %v760_v62 = vadd.f32 %v2754_v51, %v759_v59 }
 0x196   :  { %v2076_v63 = vpack.c.bf16 %v768_v57, %v765_v55  ;;  %v1911_v0 = vpack.c.bf16 %v464_v58, %v461_v56 }
 0x197   :  { %2180 = vst [vmem:[#allocation10 + $0x68] sm:$0xff] %v1916_v61   ;;  %v2071_v1 = vpack.c.bf16 %v760_v62, %v757_v60 }
 0x198   :  { %2211 = vst [vmem:[#allocation11 + $0x68] sm:$0xff] %v2076_v63   ;;  %2179 = vst [vmem:[#allocation10 + $0x60] sm:$0xff] %v1911_v0   ;;  %v2356_v2 = vpop.f32.mrb[28].mxu0 }
 0x199   :  { %2210 = vst [vmem:[#allocation11 + $0x60] sm:$0xff] %v2071_v1   ;;  %v2436_v3 = vpop.f32.mrb[28].mxu1  ;;  %v476_v4 = vpop.f32.mrb[29].mxu0  ;;  %v485_v7 = vadd.f32 %v2356_v2, %v2749_v49 }
 0x19a   :  { %v772_v5 = vpop.f32.mrb[29].mxu1  ;;  %v2357_v6 = vpop.f32.mrb[30].mxu0  ;;  %v781_v11 = vadd.f32 %v2436_v3, %v2754_v51  ;;  %v477_v12 = vadd.f32 %v2749_v49, %v476_v4 }
 0x19b   :  { %v488_v8 = vadd.f32 %v2357_v6, %v2749_v49  ;;  %v2437_v9 = vpop.f32.mrb[30].mxu1  ;;  %v479_v10 = vpop.f32.mrb[31].mxu0  ;;  %v773_v16 = vadd.f32 %v2754_v51, %v772_v5 }
 0x19c   :  { %v784_v13 = vadd.f32 %v2437_v9, %v2754_v51  ;;  %v480_v14 = vadd.f32 %v2749_v49, %v479_v10  ;;  %v775_v15 = vpop.f32.mrb[31].mxu1 }
 0x19d   :  { %v1926_v17 = vpack.c.bf16 %v488_v8, %v485_v7  ;;  %v776_v18 = vadd.f32 %v2754_v51, %v775_v15 }
 0x19e   :  { %v2086_v19 = vpack.c.bf16 %v784_v13, %v781_v11  ;;  %v1921_v20 = vpack.c.bf16 %v480_v14, %v477_v12 }
 0x19f   :  { %2182 = vst [vmem:[#allocation10 + $0x78] sm:$0xff] %v1926_v17   ;;  %v2081_v21 = vpack.c.bf16 %v776_v18, %v773_v16 }
 0x1a0   :  { %2213 = vst [vmem:[#allocation11 + $0x78] sm:$0xff] %v2086_v19   ;;  %2181 = vst [vmem:[#allocation10 + $0x70] sm:$0xff] %v1921_v20   ;;  %v2360_v22 = vpop.f32.mrb[32].mxu0 }
 0x1a1   :  { %2212 = vst [vmem:[#allocation11 + $0x70] sm:$0xff] %v2081_v21   ;;  %v2440_v23 = vpop.f32.mrb[32].mxu1  ;;  %v492_v24 = vpop.f32.mrb[33].mxu0  ;;  %v501_v27 = vadd.f32 %v2360_v22, %v2749_v49 }
 0x1a2   :  { %v788_v25 = vpop.f32.mrb[33].mxu1  ;;  %v2361_v26 = vpop.f32.mrb[34].mxu0  ;;  %v797_v31 = vadd.f32 %v2440_v23, %v2754_v51  ;;  %v493_v32 = vadd.f32 %v2749_v49, %v492_v24 }
 0x1a3   :  { %v504_v28 = vadd.f32 %v2361_v26, %v2749_v49  ;;  %v2441_v29 = vpop.f32.mrb[34].mxu1  ;;  %v495_v30 = vpop.f32.mrb[35].mxu0  ;;  %v789_v36 = vadd.f32 %v2754_v51, %v788_v25 }
 0x1a4   :  { %v800_v33 = vadd.f32 %v2441_v29, %v2754_v51  ;;  %v496_v34 = vadd.f32 %v2749_v49, %v495_v30  ;;  %v791_v35 = vpop.f32.mrb[35].mxu1 }
 0x1a5   :  { %v1936_v37 = vpack.c.bf16 %v504_v28, %v501_v27  ;;  %v792_v38 = vadd.f32 %v2754_v51, %v791_v35 }
 0x1a6   :  { %v2096_v39 = vpack.c.bf16 %v800_v33, %v797_v31  ;;  %v1931_v40 = vpack.c.bf16 %v496_v34, %v493_v32 }
 0x1a7   :  { %2184 = vst [vmem:[#allocation10 + $0x88] sm:$0xff] %v1936_v37   ;;  %v2091_v41 = vpack.c.bf16 %v792_v38, %v789_v36 }
 0x1a8   :  { %2215 = vst [vmem:[#allocation11 + $0x88] sm:$0xff] %v2096_v39   ;;  %2183 = vst [vmem:[#allocation10 + $0x80] sm:$0xff] %v1931_v40   ;;  %v2364_v42 = vpop.f32.mrb[36].mxu0 }
 0x1a9   :  { %2214 = vst [vmem:[#allocation11 + $0x80] sm:$0xff] %v2091_v41   ;;  %v2444_v43 = vpop.f32.mrb[36].mxu1  ;;  %v508_v44 = vpop.f32.mrb[37].mxu0  ;;  %v517_v47 = vadd.f32 %v2364_v42, %v2749_v49 }
 0x1aa   :  { %v804_v45 = vpop.f32.mrb[37].mxu1  ;;  %v2365_v46 = vpop.f32.mrb[38].mxu0  ;;  %v813_v53 = vadd.f32 %v2444_v43, %v2754_v51  ;;  %v509_v54 = vadd.f32 %v2749_v49, %v508_v44 }
 0x1ab   :  { %v520_v48 = vadd.f32 %v2365_v46, %v2749_v49  ;;  %v2445_v50 = vpop.f32.mrb[38].mxu1  ;;  %v511_v52 = vpop.f32.mrb[39].mxu0  ;;  %v805_v58 = vadd.f32 %v2754_v51, %v804_v45 }
 0x1ac   :  { %v816_v55 = vadd.f32 %v2445_v50, %v2754_v51  ;;  %v512_v56 = vadd.f32 %v2749_v49, %v511_v52  ;;  %v807_v57 = vpop.f32.mrb[39].mxu1 }
 0x1ad   :  { %v1946_v59 = vpack.c.bf16 %v520_v48, %v517_v47  ;;  %v808_v60 = vadd.f32 %v2754_v51, %v807_v57 }
 0x1ae   :  { %v2106_v61 = vpack.c.bf16 %v816_v55, %v813_v53  ;;  %v1941_v62 = vpack.c.bf16 %v512_v56, %v509_v54 }
 0x1af   :  { %2186 = vst [vmem:[#allocation10 + $0x98] sm:$0xff] %v1946_v59   ;;  %v2101_v63 = vpack.c.bf16 %v808_v60, %v805_v58 }
 0x1b0   :  { %2217 = vst [vmem:[#allocation11 + $0x98] sm:$0xff] %v2106_v61   ;;  %2185 = vst [vmem:[#allocation10 + $0x90] sm:$0xff] %v1941_v62   ;;  %v2368_v0 = vpop.f32.mrb[40].mxu0 }
 0x1b1   :  { %2216 = vst [vmem:[#allocation11 + $0x90] sm:$0xff] %v2101_v63   ;;  %v2448_v1 = vpop.f32.mrb[40].mxu1  ;;  %v524_v2 = vpop.f32.mrb[41].mxu0  ;;  %v533_v5 = vadd.f32 %v2368_v0, %v2749_v49 }
 0x1b2   :  { %v820_v3 = vpop.f32.mrb[41].mxu1  ;;  %v2369_v4 = vpop.f32.mrb[42].mxu0  ;;  %v829_v9 = vadd.f32 %v2448_v1, %v2754_v51  ;;  %v525_v10 = vadd.f32 %v2749_v49, %v524_v2 }
 0x1b3   :  { %v536_v6 = vadd.f32 %v2369_v4, %v2749_v49  ;;  %v2449_v7 = vpop.f32.mrb[42].mxu1  ;;  %v527_v8 = vpop.f32.mrb[43].mxu0  ;;  %v821_v14 = vadd.f32 %v2754_v51, %v820_v3 }
 0x1b4   :  { %v832_v11 = vadd.f32 %v2449_v7, %v2754_v51  ;;  %v528_v12 = vadd.f32 %v2749_v49, %v527_v8  ;;  %v823_v13 = vpop.f32.mrb[43].mxu1 }
 0x1b5   :  { %v1956_v15 = vpack.c.bf16 %v536_v6, %v533_v5  ;;  %v824_v16 = vadd.f32 %v2754_v51, %v823_v13 }
 0x1b6   :  { %v2116_v17 = vpack.c.bf16 %v832_v11, %v829_v9  ;;  %v1951_v18 = vpack.c.bf16 %v528_v12, %v525_v10 }
 0x1b7   :  { %2188 = vst [vmem:[#allocation10 + $0xa8] sm:$0xff] %v1956_v15   ;;  %v2111_v19 = vpack.c.bf16 %v824_v16, %v821_v14 }
 0x1b8   :  { %2219 = vst [vmem:[#allocation11 + $0xa8] sm:$0xff] %v2116_v17   ;;  %2187 = vst [vmem:[#allocation10 + $0xa0] sm:$0xff] %v1951_v18   ;;  %v2372_v20 = vpop.f32.mrb[44].mxu0 }
 0x1b9   :  { %2218 = vst [vmem:[#allocation11 + $0xa0] sm:$0xff] %v2111_v19   ;;  %v2452_v21 = vpop.f32.mrb[44].mxu1  ;;  %v540_v22 = vpop.f32.mrb[45].mxu0  ;;  %v549_v25 = vadd.f32 %v2372_v20, %v2749_v49 }
 0x1ba   :  { %v836_v23 = vpop.f32.mrb[45].mxu1  ;;  %v2373_v24 = vpop.f32.mrb[46].mxu0  ;;  %v845_v29 = vadd.f32 %v2452_v21, %v2754_v51  ;;  %v541_v30 = vadd.f32 %v2749_v49, %v540_v22 }
 0x1bb   :  { %v552_v26 = vadd.f32 %v2373_v24, %v2749_v49  ;;  %v2453_v27 = vpop.f32.mrb[46].mxu1  ;;  %v543_v28 = vpop.f32.mrb[47].mxu0  ;;  %v837_v34 = vadd.f32 %v2754_v51, %v836_v23 }
 0x1bc   :  { %v848_v31 = vadd.f32 %v2453_v27, %v2754_v51  ;;  %v544_v32 = vadd.f32 %v2749_v49, %v543_v28  ;;  %v839_v33 = vpop.f32.mrb[47].mxu1 }
 0x1bd   :  { %v1966_v35 = vpack.c.bf16 %v552_v26, %v549_v25  ;;  %v840_v36 = vadd.f32 %v2754_v51, %v839_v33 }
 0x1be   :  { %v2126_v37 = vpack.c.bf16 %v848_v31, %v845_v29  ;;  %v1961_v38 = vpack.c.bf16 %v544_v32, %v541_v30 }
 0x1bf   :  { %2190 = vst [vmem:[#allocation10 + $0xb8] sm:$0xff] %v1966_v35   ;;  %v2121_v39 = vpack.c.bf16 %v840_v36, %v837_v34 }
 0x1c0   :  { %2221 = vst [vmem:[#allocation11 + $0xb8] sm:$0xff] %v2126_v37   ;;  %2189 = vst [vmem:[#allocation10 + $0xb0] sm:$0xff] %v1961_v38   ;;  %v2376_v40 = vpop.f32.mrb[48].mxu0 }
 0x1c1   :  { %2220 = vst [vmem:[#allocation11 + $0xb0] sm:$0xff] %v2121_v39   ;;  %v2456_v41 = vpop.f32.mrb[48].mxu1  ;;  %v556_v42 = vpop.f32.mrb[49].mxu0  ;;  %v565_v45 = vadd.f32 %v2376_v40, %v2749_v49 }
 0x1c2   :  { %v852_v43 = vpop.f32.mrb[49].mxu1  ;;  %v2377_v44 = vpop.f32.mrb[50].mxu0  ;;  %v861_v50 = vadd.f32 %v2456_v41, %v2754_v51  ;;  %v557_v52 = vadd.f32 %v2749_v49, %v556_v42 }
 0x1c3   :  { %v568_v46 = vadd.f32 %v2377_v44, %v2749_v49  ;;  %v2457_v47 = vpop.f32.mrb[50].mxu1  ;;  %v559_v48 = vpop.f32.mrb[51].mxu0  ;;  %v853_v56 = vadd.f32 %v2754_v51, %v852_v43 }
 0x1c4   :  { %v864_v53 = vadd.f32 %v2457_v47, %v2754_v51  ;;  %v560_v54 = vadd.f32 %v2749_v49, %v559_v48  ;;  %v855_v55 = vpop.f32.mrb[51].mxu1 }
 0x1c5   :  { %v1976_v57 = vpack.c.bf16 %v568_v46, %v565_v45  ;;  %v856_v58 = vadd.f32 %v2754_v51, %v855_v55 }
 0x1c6   :  { %v2136_v59 = vpack.c.bf16 %v864_v53, %v861_v50  ;;  %v1971_v60 = vpack.c.bf16 %v560_v54, %v557_v52 }
 0x1c7   :  { %2192 = vst [vmem:[#allocation10 + $0xc8] sm:$0xff] %v1976_v57   ;;  %v2131_v61 = vpack.c.bf16 %v856_v58, %v853_v56 }
 0x1c8   :  { %2223 = vst [vmem:[#allocation11 + $0xc8] sm:$0xff] %v2136_v59   ;;  %2191 = vst [vmem:[#allocation10 + $0xc0] sm:$0xff] %v1971_v60   ;;  %v2380_v62 = vpop.f32.mrb[52].mxu0 }
 0x1c9   :  { %2222 = vst [vmem:[#allocation11 + $0xc0] sm:$0xff] %v2131_v61   ;;  %v2460_v63 = vpop.f32.mrb[52].mxu1  ;;  %v572_v0 = vpop.f32.mrb[53].mxu0  ;;  %v581_v3 = vadd.f32 %v2380_v62, %v2749_v49 }
 0x1ca   :  { %v868_v1 = vpop.f32.mrb[53].mxu1  ;;  %v2381_v2 = vpop.f32.mrb[54].mxu0  ;;  %v877_v7 = vadd.f32 %v2460_v63, %v2754_v51  ;;  %v573_v8 = vadd.f32 %v2749_v49, %v572_v0 }
 0x1cb   :  { %v584_v4 = vadd.f32 %v2381_v2, %v2749_v49  ;;  %v2461_v5 = vpop.f32.mrb[54].mxu1  ;;  %v575_v6 = vpop.f32.mrb[55].mxu0  ;;  %v869_v12 = vadd.f32 %v2754_v51, %v868_v1 }
 0x1cc   :  { %v880_v9 = vadd.f32 %v2461_v5, %v2754_v51  ;;  %v576_v10 = vadd.f32 %v2749_v49, %v575_v6  ;;  %v871_v11 = vpop.f32.mrb[55].mxu1 }
 0x1cd   :  { %v1986_v13 = vpack.c.bf16 %v584_v4, %v581_v3  ;;  %v872_v14 = vadd.f32 %v2754_v51, %v871_v11 }
 0x1ce   :  { %v2146_v15 = vpack.c.bf16 %v880_v9, %v877_v7  ;;  %v1981_v16 = vpack.c.bf16 %v576_v10, %v573_v8 }
 0x1cf   :  { %2194 = vst [vmem:[#allocation10 + $0xd8] sm:$0xff] %v1986_v13   ;;  %v2141_v17 = vpack.c.bf16 %v872_v14, %v869_v12 }
 0x1d0   :  { %2225 = vst [vmem:[#allocation11 + $0xd8] sm:$0xff] %v2146_v15   ;;  %2193 = vst [vmem:[#allocation10 + $0xd0] sm:$0xff] %v1981_v16   ;;  %v2384_v18 = vpop.f32.mrb[56].mxu0 }
 0x1d1   :  { %2224 = vst [vmem:[#allocation11 + $0xd0] sm:$0xff] %v2141_v17   ;;  %v2464_v19 = vpop.f32.mrb[56].mxu1  ;;  %v588_v20 = vpop.f32.mrb[57].mxu0  ;;  %v597_v23 = vadd.f32 %v2384_v18, %v2749_v49 }
 0x1d2   :  { %v884_v21 = vpop.f32.mrb[57].mxu1  ;;  %v2385_v22 = vpop.f32.mrb[58].mxu0  ;;  %v893_v27 = vadd.f32 %v2464_v19, %v2754_v51  ;;  %v589_v28 = vadd.f32 %v2749_v49, %v588_v20 }
 0x1d3   :  { %v600_v24 = vadd.f32 %v2385_v22, %v2749_v49  ;;  %v2465_v25 = vpop.f32.mrb[58].mxu1  ;;  %v591_v26 = vpop.f32.mrb[59].mxu0  ;;  %v885_v32 = vadd.f32 %v2754_v51, %v884_v21 }
 0x1d4   :  { %v896_v29 = vadd.f32 %v2465_v25, %v2754_v51  ;;  %v592_v30 = vadd.f32 %v2749_v49, %v591_v26  ;;  %v887_v31 = vpop.f32.mrb[59].mxu1 }
 0x1d5   :  { %v1996_v33 = vpack.c.bf16 %v600_v24, %v597_v23  ;;  %v888_v34 = vadd.f32 %v2754_v51, %v887_v31 }
 0x1d6   :  { %v2156_v35 = vpack.c.bf16 %v896_v29, %v893_v27  ;;  %v1991_v36 = vpack.c.bf16 %v592_v30, %v589_v28 }
 0x1d7   :  { %2196 = vst [vmem:[#allocation10 + $0xe8] sm:$0xff] %v1996_v33   ;;  %v2151_v37 = vpack.c.bf16 %v888_v34, %v885_v32 }
 0x1d8   :  { %2227 = vst [vmem:[#allocation11 + $0xe8] sm:$0xff] %v2156_v35   ;;  %2195 = vst [vmem:[#allocation10 + $0xe0] sm:$0xff] %v1991_v36   ;;  %v2388_v38 = vpop.f32.mrb[60].mxu0 }
 0x1d9   :  { %2226 = vst [vmem:[#allocation11 + $0xe0] sm:$0xff] %v2151_v37   ;;  %v2468_v39 = vpop.f32.mrb[60].mxu1  ;;  %v604_v40 = vpop.f32.mrb[61].mxu0  ;;  %v613_v43 = vadd.f32 %v2388_v38, %v2749_v49 }
 0x1da   :  { %v900_v41 = vpop.f32.mrb[61].mxu1  ;;  %v2389_v42 = vpop.f32.mrb[62].mxu0  ;;  %v909_v47 = vadd.f32 %v2468_v39, %v2754_v51  ;;  %v605_v48 = vadd.f32 %v2749_v49, %v604_v40 }
 0x1db   :  { %v616_v44 = vadd.f32 %v2389_v42, %v2749_v49  ;;  %v2469_v45 = vpop.f32.mrb[62].mxu1  ;;  %v607_v46 = vpop.f32.mrb[63].mxu0  ;;  %v901_v54 = vadd.f32 %v2754_v51, %v900_v41 }
 0x1dc   :  { %v912_v50 = vadd.f32 %v2469_v45, %v2754_v51  ;;  %v608_v52 = vadd.f32 %v2749_v49, %v607_v46  ;;  %v903_v53 = vpop.f32.mrb[63].mxu1 }
 0x1dd   :  { %v2006_v55 = vpack.c.bf16 %v616_v44, %v613_v43  ;;  %v904_v56 = vadd.f32 %v2754_v51, %v903_v53 }
 0x1de   :  { %v2166_v57 = vpack.c.bf16 %v912_v50, %v909_v47  ;;  %v2001_v58 = vpack.c.bf16 %v608_v52, %v605_v48 }
 0x1df   :  { %2198 = vst [vmem:[#allocation10 + $0xf8] sm:$0xff] %v2006_v55   ;;  %v2161_v59 = vpack.c.bf16 %v904_v56, %v901_v54 }
 0x1e0   :  { %2229 = vst [vmem:[#allocation11 + $0xf8] sm:$0xff] %v2166_v57   ;;  %2197 = vst [vmem:[#allocation10 + $0xf0] sm:$0xff] %v2001_v58  }
 0x1e1   :  { %2228 = vst [vmem:[#allocation11 + $0xf0] sm:$0xff] %v2161_v59  }
 0x1e2   :  { %2579 = shalt.err (!%p2576_p8)
}
 0x1e3   :  { %s2580_s10 = scalar_lea.hbm %s2921_s6, 4096 }
 0x1e4   :  { %p2581_p9 = scmp.ne.s32.totalorder %s2921_s6, %s2580_s10  ;;  %p2584_p10 = scmp.lt.u32.totalorder %s2580_s10, %s2921_s6 }
 0x1e6   :  { %p2586_p11 = pnand %p2584_p10, %p2581_p9 }
 0x1e8   :  { %2589 = shalt.err (!%p2586_p11)
}
 0x1e9   :  { %s2630_s0 = smov 64   ;;  %s2631_s27 = smov 4  }
 0x1ea   :  { %1566 = dma.vmem_to_hbm [thread:$0]  %s1561_s5, 4096, %s2921_s6, [#allocation4], %s2630_s0, %s2630_s0, %s2631_s27  }
 0x1eb   :  { %s2590_s19 = scalar_lea.vmem %s2884_s29, 4096  ;;  %p2595_p13 = scmp.lt.s32.totalorder %s2884_s29, %s2884_s29 }
 0x1ec   :  { %p2591_p12 = scmp.ne.s32.totalorder %s2884_s29, %s2590_s19  ;;  %p2596_p0 = scmp.lt.s32.totalorder %s2590_s19, %s2590_s19 }
 0x1ee   :  { %p2597_p1 = por %p2596_p0, %p2595_p13 }
 0x1f0   :  { %p2598_p2 = pnand %p2597_p1, %p2591_p12 }
 0x1f2   :  { %2601 = shalt.err (!%p2598_p2)
}
 0x1f3   :  { %s2602_s22 = scalar_lea.hbm %s2922_s7, 4096 }
 0x1f4   :  { %p2603_p3 = scmp.ne.s32.totalorder %s2922_s7, %s2602_s22  ;;  %p2606_p4 = scmp.lt.u32.totalorder %s2602_s22, %s2922_s7 }
 0x1f6   :  { %p2608_p5 = pnand %p2606_p4, %p2603_p3 }
 0x1f8   :  { %2611 = shalt.err (!%p2608_p5)
}
 0x1f9   :  { %1578 = dma.vmem_to_hbm [thread:$0]  %s2884_s29, 4096, %s2922_s7, [#allocation12], %s2630_s0, %s2630_s0, %s2631_s27  }
 0x1fa   :  { %2618 = dma.done.wait [#allocation4], 4096  }
 0x1fb   :  { %2619 = vsyncadd [#allocation4], 4294963200 }
 0x1fc   :  { %2620 = dma.done.wait [#allocation12], 4096  }
 0x1fd   :  { %2621 = vsyncadd [#allocation12], 4294963200 }
 0x1fe   :  { %1585 = vsyncpa [#allocation3], 1 }
 0x1ff   :  { %1586 = vsyncpa [#allocation6], 1 }
 0x200   :  { %1587 = vsyncpa [#allocation9], 1 }
 0x201   :  { %1588 = vsyncpa [#allocation4], 1 }
 0x202   :  { %1589 = vsyncpa [#allocation12], 1 }

</bundles_post_ra>
